<compile_context>
chip_gen: v7x
topology: tpu7x:2x2x1
jax: 0.10.0
libtpu: 0.0.40
codegen_flags: <defaults>
</compile_context>

<pallas_src>
import jax
import jax.numpy as jnp
from jax.experimental import pallas as pl
from jax.experimental.pallas import tpu as pltpu


def _conv1x1_kernel(w_ref, x_ref, o_ref):
    # w_ref: (Cout, Cin) bf16, x_ref: (1, Cin, HW) f32, o_ref: (1, Cout, HW) f32
    x_bf16 = x_ref[0].astype(jnp.bfloat16)          # cast in VMEM (VPU), no HBM pass
    o_ref[0] = jnp.dot(
        w_ref[...], x_bf16, preferred_element_type=jnp.float32
    ).astype(o_ref.dtype)


def prepare_conv1x1_weight(weight_oihw: jax.Array) -> jax.Array:
    """Hoisted, once-per-model weight prep: [Cout, Cin, 1, 1] -> bf16 [Cout, Cin]."""
    cout, cin = weight_oihw.shape[0], weight_oihw.shape[1]
    return weight_oihw.reshape(cout, cin).astype(jnp.bfloat16)


def conv1x1(x_nchw: jax.Array, w_prepped: jax.Array) -> jax.Array:
    """1x1 conv, stride 1, no bias. x_nchw: [N, Cin, H, W], w_prepped: bf16 [Cout, Cin]."""
    n, cin, h, w = x_nchw.shape
    cout = w_prepped.shape[0]
    hw = h * w

    x_chw = x_nchw.reshape(n, cin, hw)  # free view of NCHW (no transpose)

    flops = 2 * n * cout * cin * hw
    bytes_accessed = (
        w_prepped.size * w_prepped.dtype.itemsize
        + x_chw.size * x_chw.dtype.itemsize
        + n * cout * hw * 4
    )

    out = pl.pallas_call(
        _conv1x1_kernel,
        out_shape=jax.ShapeDtypeStruct((n, cout, hw), jnp.float32),
        grid=(n,),
        in_specs=[
            pl.BlockSpec((cout, cin), lambda b: (0, 0)),       # full weight block
            pl.BlockSpec((1, cin, hw), lambda b: (b, 0, 0)),   # per-image activations
        ],
        out_specs=pl.BlockSpec((1, cout, hw), lambda b: (b, 0, 0)),
        compiler_params=pltpu.CompilerParams(
            dimension_semantics=("arbitrary",)
        ),
        cost_estimate=pl.CostEstimate(
            flops=flops, transcendentals=0, bytes_accessed=bytes_accessed
        ),
    )(w_prepped, x_chw)

    return out.reshape(n, cout, h, w)  # free view back to NCHW (no transpose)


if __name__ == "__main__":
    key = jax.random.PRNGKey(0)
    kx, kw = jax.random.split(key)

    # Shapes from the module's forward: x [1, 1056, 14, 14], Conv2d(1056 -> 176, 1x1)
    N, CIN, H, W = 1, 1056, 14, 14
    COUT = 176

    x = jax.random.normal(kx, (N, CIN, H, W), dtype=jnp.float32)
    bound = (1.0 / CIN) ** 0.5
    weight = jax.random.uniform(
        kw, (COUT, CIN, 1, 1), dtype=jnp.float32, minval=-bound, maxval=bound
    )

    # Weight preprocessing hoisted out of the per-forward path (done once).
    w_prepped = prepare_conv1x1_weight(weight)

    fwd = jax.jit(conv1x1)
    out = jax.block_until_ready(fwd(x, w_prepped))

    # Reference: same math as torch Conv2d 1x1 (f32). bf16 matmul inputs with
    # f32 accumulation -> loosened tolerance.
    ref = jnp.einsum("nchw,oc->nohw", x, weight.reshape(COUT, CIN))
    assert out.shape == (N, COUT, H, W), out.shape
    assert jnp.allclose(out, ref, atol=3e-2, rtol=3e-2), float(
        jnp.max(jnp.abs(out - ref))
    )

    print("KERNEL_OK")
</pallas_src>

<mosaic_0001>
module attributes {stable_mosaic.version = 11 : i64} {
  func.func @_conv1x1_kernel(%arg0: i32, %arg1: memref<176x1056xbf16, #tpu.memory_space<vmem>>, %arg2: memref<1x1056x196xf32, #tpu.memory_space<vmem>>, %arg3: memref<1x176x196xf32, #tpu.memory_space<vmem>>) attributes {dimension_semantics = [#tpu.dimension_semantics<arbitrary>], iteration_bounds = array<i64: 1>, scalar_prefetch = 0 : i64, scratch_operands = 0 : i64, tpu.core_type = #tpu.core_type<tc>, window_params = [{pipeline_mode = #tpu.pipeline_mode<synchronous>, transform_indices = @transform_0, window_bounds = array<i64: 176, 1056>}, {transform_indices = @transform_1, window_bounds = array<i64: 1, 1056, 196>}, {transform_indices = @transform_2, window_bounds = array<i64: 1, 176, 196>}]} {
    %c0 = arith.constant 0 : index
    %c0_0 = arith.constant 0 : index
    %c0_1 = arith.constant 0 : index
    %0 = vector.load %arg2[%c0, %c0_0, %c0_1] : memref<1x1056x196xf32, #tpu.memory_space<vmem>>, vector<1x1056x196xf32>
    %1 = vector.shape_cast %0 : vector<1x1056x196xf32> to vector<1056x196xf32>
    %2 = arith.truncf %1 : vector<1056x196xf32> to vector<1056x196xbf16>
    %c0_2 = arith.constant 0 : index
    %c0_3 = arith.constant 0 : index
    %3 = vector.load %arg1[%c0_2, %c0_3] : memref<176x1056xbf16, #tpu.memory_space<vmem>>, vector<176x1056xbf16>
    %cst = arith.constant dense<0.000000e+00> : vector<176x196xf32>
    %4 = tpu.matmul %3, %2, %cst {dimension_numbers = #tpu.dot_dimension_numbers<[1], [0], [0], [1], [0, 0, 1, 1], [], []>} : vector<176x1056xbf16>, vector<1056x196xbf16>, vector<176x196xf32> -> vector<176x196xf32>
    %c0_4 = arith.constant 0 : index
    %c0_5 = arith.constant 0 : index
    %c0_6 = arith.constant 0 : index
    %5 = vector.load %arg3[%c0_4, %c0_5, %c0_6] : memref<1x176x196xf32, #tpu.memory_space<vmem>>, vector<1x176x196xf32>
    %6 = vector.shape_cast %5 : vector<1x176x196xf32> to vector<176x196xf32>
    %7 = vector.shape_cast %4 : vector<176x196xf32> to vector<1x176x196xf32>
    tpu.vector_store %arg3[%c0_4, %c0_5, %c0_6], %7 {strides = array<i32>} : memref<1x176x196xf32, #tpu.memory_space<vmem>>, vector<1x176x196xf32>,
    return
  }
  func.func @transform_0(%arg0: i32) -> (i32, i32) {
    %c0_i32 = arith.constant 0 : i32
    %c0_i32_0 = arith.constant 0 : i32
    %c0_i32_1 = arith.constant 0 : i32
    return %c0_i32, %c0_i32_0 : i32, i32
  }
  func.func @transform_1(%arg0: i32) -> (i32, i32, i32) {
    %c0_i32 = arith.constant 0 : i32
    %c0_i32_0 = arith.constant 0 : i32
    %c0_i32_1 = arith.constant 0 : i32
    return %arg0, %c0_i32, %c0_i32_0 : i32, i32, i32
  }
  func.func @transform_2(%arg0: i32) -> (i32, i32, i32) {
    %c0_i32 = arith.constant 0 : i32
    %c0_i32_0 = arith.constant 0 : i32
    %c0_i32_1 = arith.constant 0 : i32
    return %arg0, %c0_i32, %c0_i32_0 : i32, i32, i32
  }
}

</mosaic_0001>

<bundles_post_ra>
// kernel: conv1x1.1
= control target key start
LH: loop header
LB: loop body
LE: loop exit
PB: predicated region body
PF: predicated region fallthrough
CT: control target
= control target key end

     0   :  { %vm1013_vm0 = vcmask 261120   ;;  %vm1763_vm1 = vcmask 556032   ;;  %s3835_s1 = inlined_call_operand.vmem [shape: f32[1,1056,196], index: 1, kind: input, shape index: {}]   ;;  %s3836_s0 = inlined_call_operand.vmem [shape: bf16[176,1056], index: 0, kind: input, shape index: {}]   ;;  %s3837_s2 = inlined_call_operand.vmem [shape: f32[1,176,196], index: 2, kind: output, shape index: {}]  }
   0x1   :  { %v13_v0 = vld [vmem:[%s3835_s1 + $0x8] sm:$0xff]  ;;  %v15_v1 = vld [vmem:[%s3835_s1 + $0x18] sm:$0xff]  ;;  %v12_v5 = vld [vmem:[%s3835_s1] sm:$0xff] }
   0x2   :  { %v141_v2 = vld [vmem:[%s3835_s1 + $0x408] sm:$0xff]  ;;  %v277_v3 = vpack.c.bf16 %v15_v1, %v13_v0  ;;  %v143_v4 = vld [vmem:[%s3835_s1 + $0x418] sm:$0xff]  ;;  %v14_v6 = vld [vmem:[%s3835_s1 + $0x10] sm:$0xff] }
   0x3   :  { %v341_v7 = vpack.c.bf16 %v143_v4, %v141_v2  ;;  %v276_v8 = vpack.c.bf16 %v14_v6, %v12_v5  ;;  %v140_v9 = vld [vmem:[%s3835_s1 + $0x400] sm:$0xff]  ;;  %v142_v10 = vld [vmem:[%s3835_s1 + $0x410] sm:$0xff]  ;;  %v17_v11 = vld [vmem:[%s3835_s1 + $0x28] sm:$0xff] }
   0x4   :  { %1047 = vmatprep.subr.bf16.mxu1 %v277_v3  ;;  %v340_v12 = vpack.c.bf16 %v142_v10, %v140_v9  ;;  %v19_v13 = vld [vmem:[%s3835_s1 + $0x38] sm:$0xff]  ;;  %v145_v14 = vld [vmem:[%s3835_s1 + $0x428] sm:$0xff]  ;;  %v16_v18 = vld [vmem:[%s3835_s1 + $0x20] sm:$0xff] }
   0x5   :  { %v147_v15 = vld [vmem:[%s3835_s1 + $0x438] sm:$0xff]  ;;  %1333 = vmatprep.subr.bf16.mxu0 %v341_v7  ;;  %1048 = vmatpush1.bf16.msra.mxu1 %v276_v8  ;;  %v279_v16 = vpack.c.bf16 %v19_v13, %v17_v11  ;;  %v18_v19 = vld [vmem:[%s3835_s1 + $0x30] sm:$0xff]  ;;  %v144_v20 = vld [vmem:[%s3835_s1 + $0x420] sm:$0xff] }
   0x6   :  { %v343_v17 = vpack.c.bf16 %v147_v15, %v145_v14  ;;  %1334 = vmatpush1.bf16.msra.mxu0 %v340_v12  ;;  %v278_v21 = vpack.c.bf16 %v18_v19, %v16_v18  ;;  %v146_v22 = vld [vmem:[%s3835_s1 + $0x430] sm:$0xff]  ;;  %v21_v23 = vld [vmem:[%s3835_s1 + $0x48] sm:$0xff]  ;;  %v23_v24 = vld [vmem:[%s3835_s1 + $0x58] sm:$0xff] }
   0x7   :  { %1049 = vmatprep.subr.bf16.mxu1 %v279_v16  ;;  %v342_v25 = vpack.c.bf16 %v146_v22, %v144_v20  ;;  %v281_v26 = vpack.c.bf16 %v23_v24, %v21_v23  ;;  %v149_v27 = vld [vmem:[%s3835_s1 + $0x448] sm:$0xff]  ;;  %v151_v28 = vld [vmem:[%s3835_s1 + $0x458] sm:$0xff]  ;;  %v20_v29 = vld [vmem:[%s3835_s1 + $0x40] sm:$0xff] }
   0x8   :  { %1335 = vmatprep.subr.bf16.mxu0 %v343_v17  ;;  %v345_v30 = vpack.c.bf16 %v151_v28, %v149_v27  ;;  %v22_v31 = vld [vmem:[%s3835_s1 + $0x50] sm:$0xff]  ;;  %v148_v32 = vld [vmem:[%s3835_s1 + $0x440] sm:$0xff]  ;;  %v25_v35 = vld [vmem:[%s3835_s1 + $0x68] sm:$0xff] }
   0x9   :  { %v150_v33 = vld [vmem:[%s3835_s1 + $0x450] sm:$0xff]  ;;  %1050 = vmatpush1.bf16.msra.mxu1 %v278_v21  ;;  %v280_v34 = vpack.c.bf16 %v22_v31, %v20_v29  ;;  %v27_v36 = vld [vmem:[%s3835_s1 + $0x78] sm:$0xff]  ;;  %v153_v37 = vld [vmem:[%s3835_s1 + $0x468] sm:$0xff] }
   0xa   :  { %1336 = vmatpush1.bf16.msra.mxu0 %v342_v25  ;;  %1051 = vmatprep.subr.bf16.mxu1 %v281_v26  ;;  %v344_v38 = vpack.c.bf16 %v150_v33, %v148_v32  ;;  %v283_v39 = vpack.c.bf16 %v27_v36, %v25_v35  ;;  %v155_v40 = vld [vmem:[%s3835_s1 + $0x478] sm:$0xff]  ;;  %v24_v41 = vld [vmem:[%s3835_s1 + $0x60] sm:$0xff]  ;;  %v26_v42 = vld [vmem:[%s3835_s1 + $0x70] sm:$0xff] }
   0xb   :  { %1337 = vmatprep.subr.bf16.mxu0 %v345_v30  ;;  %v347_v43 = vpack.c.bf16 %v155_v40, %v153_v37  ;;  %v152_v44 = vld [vmem:[%s3835_s1 + $0x460] sm:$0xff]  ;;  %v154_v45 = vld [vmem:[%s3835_s1 + $0x470] sm:$0xff]  ;;  %v29_v46 = vld [vmem:[%s3835_s1 + $0x88] sm:$0xff]  ;;  %v282_v50 = vpack.c.bf16 %v26_v42, %v24_v41 }
   0xc   :  { %v31_v47 = vld [vmem:[%s3835_s1 + $0x98] sm:$0xff]  ;;  %v157_v48 = vld [vmem:[%s3835_s1 + $0x488] sm:$0xff]  ;;  %v346_v51 = vpack.c.bf16 %v154_v45, %v152_v44  ;;  %v28_v53 = vld [vmem:[%s3835_s1 + $0x80] sm:$0xff] }
   0xd   :  { %v159_v49 = vld [vmem:[%s3835_s1 + $0x498] sm:$0xff]  ;;  %1052 = vmatpush1.bf16.msra.mxu1 %v280_v34  ;;  %v285_v52 = vpack.c.bf16 %v31_v47, %v29_v46  ;;  %v30_v54 = vld [vmem:[%s3835_s1 + $0x90] sm:$0xff]  ;;  %v156_v55 = vld [vmem:[%s3835_s1 + $0x480] sm:$0xff] }
   0xe   :  { %1338 = vmatpush1.bf16.msra.mxu0 %v344_v38  ;;  %1053 = vmatprep.subr.bf16.mxu1 %v283_v39  ;;  %v349_v56 = vpack.c.bf16 %v159_v49, %v157_v48  ;;  %v158_v57 = vld [vmem:[%s3835_s1 + $0x490] sm:$0xff]  ;;  %v33_v58 = vld [vmem:[%s3835_s1 + $0xa8] sm:$0xff]  ;;  %v35_v59 = vld [vmem:[%s3835_s1 + $0xb8] sm:$0xff]  ;;  %v284_v62 = vpack.c.bf16 %v30_v54, %v28_v53 }
   0xf   :  { %1339 = vmatprep.subr.bf16.mxu0 %v347_v43  ;;  %v161_v60 = vld [vmem:[%s3835_s1 + $0x4a8] sm:$0xff]  ;;  %v163_v61 = vld [vmem:[%s3835_s1 + $0x4b8] sm:$0xff]  ;;  %v348_v63 = vpack.c.bf16 %v158_v57, %v156_v55  ;;  %v287_v0 = vpack.c.bf16 %v35_v59, %v33_v58  ;;  %v32_v1 = vld [vmem:[%s3835_s1 + $0xa0] sm:$0xff] }
  0x10   :  { %v34_v2 = vld [vmem:[%s3835_s1 + $0xb0] sm:$0xff]  ;;  %v160_v3 = vld [vmem:[%s3835_s1 + $0x4a0] sm:$0xff]  ;;  %v351_v4 = vpack.c.bf16 %v163_v61, %v161_v60  ;;  %v37_v6 = vld [vmem:[%s3835_s1 + $0xc8] sm:$0xff] }
  0x11   :  { %1054 = vmatpush1.bf16.msra.mxu1 %v282_v50  ;;  %v162_v5 = vld [vmem:[%s3835_s1 + $0x4b0] sm:$0xff]  ;;  %v39_v7 = vld [vmem:[%s3835_s1 + $0xd8] sm:$0xff]  ;;  %v165_v8 = vld [vmem:[%s3835_s1 + $0x4c8] sm:$0xff]  ;;  %v286_v10 = vpack.c.bf16 %v34_v2, %v32_v1 }
  0x12   :  { %1340 = vmatpush1.bf16.msra.mxu0 %v346_v51  ;;  %1055 = vmatprep.subr.bf16.mxu1 %v285_v52  ;;  %v167_v9 = vld [vmem:[%s3835_s1 + $0x4d8] sm:$0xff]  ;;  %v350_v11 = vpack.c.bf16 %v162_v5, %v160_v3  ;;  %v289_v12 = vpack.c.bf16 %v39_v7, %v37_v6  ;;  %v36_v13 = vld [vmem:[%s3835_s1 + $0xc0] sm:$0xff]  ;;  %v38_v14 = vld [vmem:[%s3835_s1 + $0xd0] sm:$0xff] }
  0x13   :  { %1341 = vmatprep.subr.bf16.mxu0 %v349_v56  ;;  %v164_v15 = vld [vmem:[%s3835_s1 + $0x4c0] sm:$0xff]  ;;  %v353_v16 = vpack.c.bf16 %v167_v9, %v165_v8  ;;  %v166_v17 = vld [vmem:[%s3835_s1 + $0x4d0] sm:$0xff]  ;;  %v41_v18 = vld [vmem:[%s3835_s1 + $0xe8] sm:$0xff]  ;;  %v288_v22 = vpack.c.bf16 %v38_v14, %v36_v13 }
  0x14   :  { %v43_v19 = vld [vmem:[%s3835_s1 + $0xf8] sm:$0xff]  ;;  %v169_v20 = vld [vmem:[%s3835_s1 + $0x4e8] sm:$0xff]  ;;  %v352_v23 = vpack.c.bf16 %v166_v17, %v164_v15  ;;  %v40_v25 = vld [vmem:[%s3835_s1 + $0xe0] sm:$0xff] }
  0x15   :  { %1056 = vmatpush1.bf16.msra.mxu1 %v284_v62  ;;  %v171_v21 = vld [vmem:[%s3835_s1 + $0x4f8] sm:$0xff]  ;;  %v291_v24 = vpack.c.bf16 %v43_v19, %v41_v18  ;;  %v42_v26 = vld [vmem:[%s3835_s1 + $0xf0] sm:$0xff]  ;;  %v168_v27 = vld [vmem:[%s3835_s1 + $0x4e0] sm:$0xff] }
  0x16   :  { %1342 = vmatpush1.bf16.msra.mxu0 %v348_v63  ;;  %1057 = vmatprep.subr.bf16.mxu1 %v287_v0  ;;  %v355_v28 = vpack.c.bf16 %v171_v21, %v169_v20  ;;  %v170_v29 = vld [vmem:[%s3835_s1 + $0x4f0] sm:$0xff]  ;;  %v45_v30 = vld [vmem:[%s3835_s1 + $0x108] sm:$0xff]  ;;  %v47_v31 = vld [vmem:[%s3835_s1 + $0x118] sm:$0xff]  ;;  %v290_v34 = vpack.c.bf16 %v42_v26, %v40_v25 }
  0x17   :  { %1343 = vmatprep.subr.bf16.mxu0 %v351_v4  ;;  %v173_v32 = vld [vmem:[%s3835_s1 + $0x508] sm:$0xff]  ;;  %v175_v33 = vld [vmem:[%s3835_s1 + $0x518] sm:$0xff]  ;;  %v354_v35 = vpack.c.bf16 %v170_v29, %v168_v27  ;;  %v293_v36 = vpack.c.bf16 %v47_v31, %v45_v30  ;;  %v44_v37 = vld [vmem:[%s3835_s1 + $0x100] sm:$0xff] }
  0x18   :  { %v46_v38 = vld [vmem:[%s3835_s1 + $0x110] sm:$0xff]  ;;  %v172_v39 = vld [vmem:[%s3835_s1 + $0x500] sm:$0xff]  ;;  %v357_v40 = vpack.c.bf16 %v175_v33, %v173_v32  ;;  %v49_v42 = vld [vmem:[%s3835_s1 + $0x128] sm:$0xff] }
  0x19   :  { %1058 = vmatpush1.bf16.msra.mxu1 %v286_v10  ;;  %v174_v41 = vld [vmem:[%s3835_s1 + $0x510] sm:$0xff]  ;;  %v51_v43 = vld [vmem:[%s3835_s1 + $0x138] sm:$0xff]  ;;  %v177_v44 = vld [vmem:[%s3835_s1 + $0x528] sm:$0xff]  ;;  %v292_v46 = vpack.c.bf16 %v46_v38, %v44_v37 }
  0x1a   :  { %1344 = vmatpush1.bf16.msra.mxu0 %v350_v11  ;;  %1059 = vmatprep.subr.bf16.mxu1 %v289_v12  ;;  %v179_v45 = vld [vmem:[%s3835_s1 + $0x538] sm:$0xff]  ;;  %v356_v47 = vpack.c.bf16 %v174_v41, %v172_v39  ;;  %v295_v48 = vpack.c.bf16 %v51_v43, %v49_v42  ;;  %v48_v49 = vld [vmem:[%s3835_s1 + $0x120] sm:$0xff]  ;;  %v50_v50 = vld [vmem:[%s3835_s1 + $0x130] sm:$0xff] }
  0x1b   :  { %1345 = vmatprep.subr.bf16.mxu0 %v353_v16  ;;  %v176_v51 = vld [vmem:[%s3835_s1 + $0x520] sm:$0xff]  ;;  %v359_v52 = vpack.c.bf16 %v179_v45, %v177_v44  ;;  %v178_v53 = vld [vmem:[%s3835_s1 + $0x530] sm:$0xff]  ;;  %v53_v54 = vld [vmem:[%s3835_s1 + $0x148] sm:$0xff]  ;;  %v294_v58 = vpack.c.bf16 %v50_v50, %v48_v49 }
  0x1c   :  { %v55_v55 = vld [vmem:[%s3835_s1 + $0x158] sm:$0xff]  ;;  %v181_v56 = vld [vmem:[%s3835_s1 + $0x548] sm:$0xff]  ;;  %v358_v59 = vpack.c.bf16 %v178_v53, %v176_v51  ;;  %v52_v61 = vld [vmem:[%s3835_s1 + $0x140] sm:$0xff] }
  0x1d   :  { %1060 = vmatpush1.bf16.msra.mxu1 %v288_v22  ;;  %v183_v57 = vld [vmem:[%s3835_s1 + $0x558] sm:$0xff]  ;;  %v297_v60 = vpack.c.bf16 %v55_v55, %v53_v54  ;;  %v54_v62 = vld [vmem:[%s3835_s1 + $0x150] sm:$0xff]  ;;  %v180_v63 = vld [vmem:[%s3835_s1 + $0x540] sm:$0xff] }
  0x1e   :  { %1346 = vmatpush1.bf16.msra.mxu0 %v352_v23  ;;  %1061 = vmatprep.subr.bf16.mxu1 %v291_v24  ;;  %v361_v0 = vpack.c.bf16 %v183_v57, %v181_v56  ;;  %v182_v1 = vld [vmem:[%s3835_s1 + $0x550] sm:$0xff]  ;;  %v57_v2 = vld [vmem:[%s3835_s1 + $0x168] sm:$0xff]  ;;  %v59_v3 = vld [vmem:[%s3835_s1 + $0x178] sm:$0xff]  ;;  %v296_v6 = vpack.c.bf16 %v54_v62, %v52_v61 }
  0x1f   :  { %1347 = vmatprep.subr.bf16.mxu0 %v355_v28  ;;  %v185_v4 = vld [vmem:[%s3835_s1 + $0x568] sm:$0xff]  ;;  %v187_v5 = vld [vmem:[%s3835_s1 + $0x578] sm:$0xff]  ;;  %v56_v7 = vld [vmem:[%s3835_s1 + $0x160] sm:$0xff]  ;;  %v360_v9 = vpack.c.bf16 %v182_v1, %v180_v63  ;;  %v299_v10 = vpack.c.bf16 %v59_v3, %v57_v2 }
  0x20   :  { %v58_v8 = vld [vmem:[%s3835_s1 + $0x170] sm:$0xff]  ;;  %v184_v11 = vld [vmem:[%s3835_s1 + $0x560] sm:$0xff]  ;;  %v61_v13 = vld [vmem:[%s3835_s1 + $0x188] sm:$0xff]  ;;  %v363_v14 = vpack.c.bf16 %v187_v5, %v185_v4 }
  0x21   :  { %1062 = vmatpush1.bf16.msra.mxu1 %v290_v34  ;;  %v186_v12 = vld [vmem:[%s3835_s1 + $0x570] sm:$0xff]  ;;  %v63_v15 = vld [vmem:[%s3835_s1 + $0x198] sm:$0xff]  ;;  %v189_v16 = vld [vmem:[%s3835_s1 + $0x588] sm:$0xff]  ;;  %v298_v19 = vpack.c.bf16 %v58_v8, %v56_v7 }
  0x22   :  { %1348 = vmatpush1.bf16.msra.mxu0 %v354_v35  ;;  %1063 = vmatprep.subr.bf16.mxu1 %v293_v36  ;;  %v191_v17 = vld [vmem:[%s3835_s1 + $0x598] sm:$0xff]  ;;  %v2132_v18 = vld [vmem:[%s3836_s0 + $0x4] ss:$36 sps:$4 sm:$0xff]   ;;  %v362_v21 = vpack.c.bf16 %v186_v12, %v184_v11  ;;  %v301_v22 = vpack.c.bf16 %v63_v15, %v61_v13  ;;  %v62_v23 = vld [vmem:[%s3835_s1 + $0x190] sm:$0xff] }
  0x23   :  { %1349 = vmatprep.subr.bf16.mxu0 %v357_v40  ;;  %v60_v20 = vld [vmem:[%s3835_s1 + $0x180] sm:$0xff]  ;;  %v2135_v25 = vld [vmem:[%s3836_s0 + $0x14] ss:$36 sps:$4 sm:$0xff]   ;;  %v365_v26 = vpack.c.bf16 %v191_v17, %v189_v16  ;;  %v65_v28 = vld [vmem:[%s3835_s1 + $0x1a8] sm:$0xff]  ;;  %1079 = vmatprep.mubr.bf16.mxu1 %v2132_v18 }
  0x24   :  { %v188_v24 = vld [vmem:[%s3835_s1 + $0x580] sm:$0xff]  ;;  %v190_v27 = vld [vmem:[%s3835_s1 + $0x590] sm:$0xff]  ;;  %v67_v29 = vld [vmem:[%s3835_s1 + $0x1b8] sm:$0xff]  ;;  %1365 = vmatprep.mubr.bf16.mxu0 %v2135_v25  ;;  %v300_v33 = vpack.c.bf16 %v62_v23, %v60_v20 }
  0x25   :  { %1064 = vmatpush1.bf16.msra.mxu1 %v292_v46  ;;  %v193_v30 = vld [vmem:[%s3835_s1 + $0x5a8] sm:$0xff]  ;;  %v195_v31 = vld [vmem:[%s3835_s1 + $0x5b8] sm:$0xff]  ;;  %v64_v32 = vld [vmem:[%s3835_s1 + $0x1a0] sm:$0xff]  ;;  %v364_v35 = vpack.c.bf16 %v190_v27, %v188_v24  ;;  %v303_v36 = vpack.c.bf16 %v67_v29, %v65_v28 }
  0x26   :  { %1350 = vmatpush1.bf16.msra.mxu0 %v356_v47  ;;  %1065 = vmatprep.subr.bf16.mxu1 %v295_v48  ;;  %v66_v34 = vld [vmem:[%s3835_s1 + $0x1b0] sm:$0xff]  ;;  %v192_v37 = vld [vmem:[%s3835_s1 + $0x5a0] sm:$0xff]  ;;  %v367_v39 = vpack.c.bf16 %v195_v31, %v193_v30  ;;  %v69_v40 = vld [vmem:[%s3835_s1 + $0x1c8] sm:$0xff] }
  0x27   :  { %1351 = vmatprep.subr.bf16.mxu0 %v359_v52  ;;  %v194_v38 = vld [vmem:[%s3835_s1 + $0x5b0] sm:$0xff]  ;;  %v71_v41 = vld [vmem:[%s3835_s1 + $0x1d8] sm:$0xff]  ;;  %v197_v42 = vld [vmem:[%s3835_s1 + $0x5c8] sm:$0xff]  ;;  %v302_v44 = vpack.c.bf16 %v66_v34, %v64_v32 }
  0x28   :  { %v199_v43 = vld [vmem:[%s3835_s1 + $0x5d8] sm:$0xff]  ;;  %v68_v45 = vld [vmem:[%s3835_s1 + $0x1c0] sm:$0xff]  ;;  %v70_v46 = vld [vmem:[%s3835_s1 + $0x1d0] sm:$0xff]  ;;  %v366_v47 = vpack.c.bf16 %v194_v38, %v192_v37  ;;  %v305_v48 = vpack.c.bf16 %v71_v41, %v69_v40 }
  0x29   :  { %1066 = vmatpush1.bf16.msra.mxu1 %v294_v58  ;;  %v196_v49 = vld [vmem:[%s3835_s1 + $0x5c0] sm:$0xff]  ;;  %v198_v50 = vld [vmem:[%s3835_s1 + $0x5d0] sm:$0xff]  ;;  %v73_v51 = vld [vmem:[%s3835_s1 + $0x1e8] sm:$0xff]  ;;  %v369_v52 = vpack.c.bf16 %v199_v43, %v197_v42  ;;  %v304_v56 = vpack.c.bf16 %v70_v46, %v68_v45 }
  0x2a   :  { %1352 = vmatpush1.bf16.msra.mxu0 %v358_v59  ;;  %1067 = vmatprep.subr.bf16.mxu1 %v297_v60  ;;  %v75_v53 = vld [vmem:[%s3835_s1 + $0x1f8] sm:$0xff]  ;;  %v201_v54 = vld [vmem:[%s3835_s1 + $0x5e8] sm:$0xff]  ;;  %v368_v57 = vpack.c.bf16 %v198_v50, %v196_v49  ;;  %v72_v59 = vld [vmem:[%s3835_s1 + $0x1e0] sm:$0xff] }
  0x2b   :  { %1353 = vmatprep.subr.bf16.mxu0 %v361_v0  ;;  %v203_v55 = vld [vmem:[%s3835_s1 + $0x5f8] sm:$0xff]  ;;  %v307_v58 = vpack.c.bf16 %v75_v53, %v73_v51  ;;  %v74_v60 = vld [vmem:[%s3835_s1 + $0x1f0] sm:$0xff]  ;;  %v200_v61 = vld [vmem:[%s3835_s1 + $0x5e0] sm:$0xff] }
  0x2c   :  { %v371_v62 = vpack.c.bf16 %v203_v55, %v201_v54  ;;  %v202_v63 = vld [vmem:[%s3835_s1 + $0x5f0] sm:$0xff]  ;;  %v77_v0 = vld [vmem:[%s3835_s1 + $0x208] sm:$0xff]  ;;  %v79_v1 = vld [vmem:[%s3835_s1 + $0x218] sm:$0xff]  ;;  %v306_v4 = vpack.c.bf16 %v74_v60, %v72_v59 }
  0x2d   :  { %1068 = vmatpush1.bf16.msra.mxu1 %v296_v6  ;;  %v205_v2 = vld [vmem:[%s3835_s1 + $0x608] sm:$0xff]  ;;  %v207_v3 = vld [vmem:[%s3835_s1 + $0x618] sm:$0xff]  ;;  %v204_v5 = vld [vmem:[%s3835_s1 + $0x600] sm:$0xff]  ;;  %v370_v6 = vpack.c.bf16 %v202_v63, %v200_v61 }
  0x2e   :  { %1354 = vmatpush1.bf16.msra.mxu0 %v360_v9  ;;  %1069 = vmatprep.subr.bf16.mxu1 %v299_v10  ;;  %v2130_v7 = vld [vmem:[%s3836_s0] ss:$36 sps:$4 sm:$0xff]   ;;  %v206_v8 = vld [vmem:[%s3835_s1 + $0x610] sm:$0xff]  ;;  %v309_v9 = vpack.c.bf16 %v79_v1, %v77_v0  ;;  %v2703_v11 = vpack.c.bf16 %v207_v3, %v205_v2  ;;  %v211_v15 = vld [vmem:[%s3835_s1 + $0x638] sm:$0xff] }
  0x2f   :  { %1355 = vmatprep.subr.bf16.mxu0 %v363_v14  ;;  %v76_v10 = vld [vmem:[%s3835_s1 + $0x200] sm:$0xff]  ;;  %v78_v12 = vld [vmem:[%s3835_s1 + $0x210] sm:$0xff]  ;;  %v209_v14 = vld [vmem:[%s3835_s1 + $0x628] sm:$0xff] }
  0x30   :  { %v2133_v13 = vld [vmem:[%s3836_s0 + $0x10] ss:$36 sps:$4 sm:$0xff]   ;;  %v81_v17 = vld [vmem:[%s3835_s1 + $0x228] sm:$0xff]  ;;  %v83_v18 = vld [vmem:[%s3835_s1 + $0x238] sm:$0xff]  ;;  %v308_v20 = vpack.c.bf16 %v78_v12, %v76_v10  ;;  %v2738_v24 = vpack.c.bf16 %v211_v15, %v209_v14 }
  0x31   :  { %1070 = vmatpush1.bf16.msra.mxu1 %v298_v19  ;;  %v2136_v16 = vld [vmem:[%s3836_s0 + $0x4c] ss:$36 sps:$4 sm:$0xff]   ;;  %v2726_v19 = vpack.c.bf16 %v206_v8, %v204_v5  ;;  %v215_v28 = vld [vmem:[%s3835_s1 + $0x658] sm:$0xff]  ;;  %v311_v29 = vpack.c.bf16 %v83_v18, %v81_v17  ;;  %v212_v34 = vld [vmem:[%s3835_s1 + $0x640] sm:$0xff] }
  0x32   :  { %1356 = vmatpush1.bf16.msra.mxu0 %v362_v21  ;;  %1071 = vmatprep.subr.bf16.mxu1 %v301_v22  ;;  %v2138_v21 = vld [vmem:[%s3836_s0 + $0x5c] ss:$36 sps:$4 sm:$0xff]   ;;  %v210_v23 = vld [vmem:[%s3835_s1 + $0x630] sm:$0xff]  ;;  %v213_v25 = vld [vmem:[%s3835_s1 + $0x648] sm:$0xff] }
  0x33   :  { %1357 = vmatprep.subr.bf16.mxu0 %v365_v26  ;;  %v208_v22 = vld [vmem:[%s3835_s1 + $0x620] sm:$0xff]  ;;  %v82_v27 = vld [vmem:[%s3835_s1 + $0x230] sm:$0xff]  ;;  %v85_v30 = vld [vmem:[%s3835_s1 + $0x248] sm:$0xff]  ;;  %v2771_v37 = vpack.c.bf16 %v215_v28, %v213_v25 }
  0x34   :  { %v80_v26 = vld [vmem:[%s3835_s1 + $0x220] sm:$0xff]  ;;  %v87_v31 = vld [vmem:[%s3835_s1 + $0x258] sm:$0xff]  ;;  %v2759_v32 = vpack.c.bf16 %v210_v23, %v208_v22  ;;  %v214_v38 = vld [vmem:[%s3835_s1 + $0x650] sm:$0xff] }
  0x35   :  { %1072 = vmatpush1.bf16.msra.mxu1 %v300_v33  ;;  %v2140_v33 = vld [vmem:[%s3836_s0 + $0x48] ss:$36 sps:$4 sm:$0xff]   ;;  %v313_v40 = vpack.c.bf16 %v87_v31, %v85_v30  ;;  %v219_v43 = vld [vmem:[%s3835_s1 + $0x678] sm:$0xff]  ;;  %v86_v45 = vld [vmem:[%s3835_s1 + $0x250] sm:$0xff]  ;;  %v2804_v49 = vpack.c.bf16 %v214_v38, %v212_v34 }
  0x36   :  { %1358 = vmatpush1.bf16.msra.mxu0 %v364_v35  ;;  %1073 = vmatprep.subr.bf16.mxu1 %v303_v36  ;;  %v310_v35 = vpack.c.bf16 %v82_v27, %v80_v26  ;;  %v2141_v36 = vld [vmem:[%s3836_s0 + $0x58] ss:$36 sps:$4 sm:$0xff]   ;;  %v217_v41 = vld [vmem:[%s3835_s1 + $0x668] sm:$0xff]  ;;  %v216_v46 = vld [vmem:[%s3835_s1 + $0x660] sm:$0xff] }
  0x37   :  { %1359 = vmatprep.subr.bf16.mxu0 %v367_v39  ;;  %v2142_v39 = vld [vmem:[%s3836_s0 + $0x94] ss:$36 sps:$4 sm:$0xff]   ;;  %v2144_v42 = vld [vmem:[%s3836_s0 + $0xa4] ss:$36 sps:$4 sm:$0xff]   ;;  %v2810_v51 = vpack.c.bf16 %v219_v43, %v217_v41  ;;  %v2148_v0 = vld [vmem:[%s3836_s0 + $0xdc] ss:$36 sps:$4 sm:$0xff]  }
  0x38   :  { %v218_v50 = vld [vmem:[%s3835_s1 + $0x670] sm:$0xff]  ;;  %v221_v53 = vld [vmem:[%s3835_s1 + $0x688] sm:$0xff]  ;;  %v223_v54 = vld [vmem:[%s3835_s1 + $0x698] sm:$0xff] }
  0x39   :  { %1074 = vmatpush1.bf16.msra.mxu1 %v302_v44  ;;  %v84_v44 = vld [vmem:[%s3835_s1 + $0x240] sm:$0xff]  ;;  %v95_v59 = vld [vmem:[%s3835_s1 + $0x298] sm:$0xff]  ;;  %v2146_v60 = vld [vmem:[%s3836_s0 + $0x90] ss:$36 sps:$4 sm:$0xff]   ;;  %v2834_v61 = vpack.c.bf16 %v218_v50, %v216_v46  ;;  %v2840_v63 = vpack.c.bf16 %v223_v54, %v221_v53 }
  0x3a   :  { %1360 = vmatpush1.bf16.msra.mxu0 %v366_v47  ;;  %1075 = vmatprep.subr.bf16.mxu1 %v305_v48  ;;  %v89_v47 = vld [vmem:[%s3835_s1 + $0x268] sm:$0xff]  ;;  %v91_v48 = vld [vmem:[%s3835_s1 + $0x278] sm:$0xff]  ;;  %v88_v55 = vld [vmem:[%s3835_s1 + $0x260] sm:$0xff] }
  0x3b   :  { %1361 = vmatprep.subr.bf16.mxu0 %v369_v52  ;;  %v312_v52 = vpack.c.bf16 %v86_v45, %v84_v44  ;;  %v220_v1 = vld [vmem:[%s3835_s1 + $0x680] sm:$0xff]  ;;  %v222_v2 = vld [vmem:[%s3835_s1 + $0x690] sm:$0xff]  ;;  %v97_v12 = vld [vmem:[%s3835_s1 + $0x2a8] sm:$0xff] }
  0x3c   :  { %v2150_v5 = vld [vmem:[%s3836_s0 + $0xec] ss:$36 sps:$4 sm:$0xff]   ;;  %v92_v8 = vld [vmem:[%s3835_s1 + $0x280] sm:$0xff]  ;;  %v2876_v14 = vpack.c.bf16 %v222_v2, %v220_v1  ;;  %v103_v26 = vld [vmem:[%s3835_s1 + $0x2d8] sm:$0xff] }
  0x3d   :  { %1076 = vmatpush1.bf16.msra.mxu1 %v304_v56  ;;  %v315_v56 = vpack.c.bf16 %v91_v48, %v89_v47  ;;  %v224_v10 = vld [vmem:[%s3835_s1 + $0x6a0] sm:$0xff]  ;;  %v226_v15 = vld [vmem:[%s3835_s1 + $0x6b0] sm:$0xff]  ;;  %v229_v18 = vld [vmem:[%s3835_s1 + $0x6c8] sm:$0xff] }
  0x3e   :  { %1362 = vmatpush1.bf16.msra.mxu0 %v368_v57  ;;  %1077 = vmatprep.subr.bf16.mxu1 %v307_v58  ;;  %v90_v57 = vld [vmem:[%s3835_s1 + $0x270] sm:$0xff]  ;;  %v93_v58 = vld [vmem:[%s3835_s1 + $0x288] sm:$0xff]  ;;  %v96_v22 = vld [vmem:[%s3835_s1 + $0x2a0] sm:$0xff]  ;;  %v2906_v28 = vpack.c.bf16 %v226_v15, %v224_v10 }
  0x3f   :  { %1363 = vmatprep.subr.bf16.mxu0 %v371_v62  ;;  %v2147_v62 = vld [vmem:[%s3836_s0 + $0xa0] ss:$36 sps:$4 sm:$0xff]   ;;  %v314_v3 = vpack.c.bf16 %v90_v57, %v88_v55  ;;  %v98_v23 = vld [vmem:[%s3835_s1 + $0x2b0] sm:$0xff]  ;;  %v101_v25 = vld [vmem:[%s3835_s1 + $0x2c8] sm:$0xff] }
  0x40   :  { %v2152_v27 = vld [vmem:[%s3836_s0 + $0xd8] ss:$36 sps:$4 sm:$0xff]   ;;  %v230_v30 = vld [vmem:[%s3835_s1 + $0x6d0] sm:$0xff]  ;;  %v233_v31 = vld [vmem:[%s3835_s1 + $0x6e8] sm:$0xff] }
  0x41   :  { %1078 = vmatpush1.bf16.msra.mxu1 %v306_v4  ;;  %v225_v4 = vld [vmem:[%s3835_s1 + $0x6a8] sm:$0xff]  ;;  %v235_v38 = vld [vmem:[%s3835_s1 + $0x6f8] sm:$0xff]  ;;  %v102_v41 = vld [vmem:[%s3835_s1 + $0x2d0] sm:$0xff] }
  0x42   :  { %1364 = vmatpush1.bf16.msra.mxu0 %v370_v6  ;;  %1190 = vmatprep.subr.bf16.mxu1 %v309_v9  ;;  %v317_v6 = vpack.c.bf16 %v95_v59, %v93_v58  ;;  %v94_v9 = vld [vmem:[%s3835_s1 + $0x290] sm:$0xff]  ;;  %v2154_v34 = vld [vmem:[%s3836_s0 + $0x124] ss:$36 sps:$4 sm:$0xff]   ;;  %v107_v43 = vld [vmem:[%s3835_s1 + $0x2f8] sm:$0xff]  ;;  %v2948_v46 = vpack.c.bf16 %v235_v38, %v233_v31 }
  0x43   :  { %1476 = vmatprep.subr.bf16.mxu0 %v2703_v11  ;;  %v316_v17 = vpack.c.bf16 %v94_v9, %v92_v8  ;;  %v2156_v44 = vld [vmem:[%s3836_s0 + $0x134] ss:$36 sps:$4 sm:$0xff]   ;;  %v232_v48 = vld [vmem:[%s3835_s1 + $0x6e0] sm:$0xff]  ;;  %v109_v57 = vld [vmem:[%s3835_s1 + $0x308] sm:$0xff] }
  0x44   :  { %1080 = vmatmul.mubr.bf16.vlgmr.msra.gmra.mrb[0].mxu1 %v2130_v7  ;;  %v227_v7 = vld [vmem:[%s3835_s1 + $0x6b8] sm:$0xff]  ;;  %v234_v50 = vld [vmem:[%s3835_s1 + $0x6f0] sm:$0xff]  ;;  %v104_v55 = vld [vmem:[%s3835_s1 + $0x2e0] sm:$0xff] }
  0x45   :  { %1366 = vmatmul.mubr.bf16.vlgmr.msra.gmra.mrb[0].mxu0 %v2133_v13  ;;  %1089 = vmatprep.mubr.bf16.mxu1 %v2136_v16  ;;  %v99_v13 = vld [vmem:[%s3835_s1 + $0x2b8] sm:$0xff]  ;;  %v2882_v16 = vpack.c.bf16 %v227_v7, %v225_v4  ;;  %v2158_v59 = vld [vmem:[%s3836_s0 + $0x120] ss:$36 sps:$4 sm:$0xff]   ;;  %v241_v1 = vld [vmem:[%s3835_s1 + $0x728] sm:$0xff] }
  0x46   :  { %1477 = vmatpush1.bf16.msra.mxu0 %v2726_v19  ;;  %1191 = vmatpush1.bf16.msra.mxu1 %v308_v20  ;;  %v231_v20 = vld [vmem:[%s3835_s1 + $0x6d8] sm:$0xff]  ;;  %v2159_v2 = vld [vmem:[%s3836_s0 + $0x130] ss:$36 sps:$4 sm:$0xff]   ;;  %v108_v7 = vld [vmem:[%s3835_s1 + $0x300] sm:$0xff] }
  0x47   :  { %1478 = vmatprep.subr.bf16.mxu0 %v2738_v24  ;;  %1375 = vmatprep.mubr.bf16.mxu0 %v2138_v21  ;;  %v319_v21 = vpack.c.bf16 %v99_v13, %v97_v12  ;;  %v239_v53 = vld [vmem:[%s3835_s1 + $0x718] sm:$0xff]  ;;  %v110_v9 = vld [vmem:[%s3835_s1 + $0x310] sm:$0xff]  ;;  %v113_v10 = vld [vmem:[%s3835_s1 + $0x328] sm:$0xff] }
  0x48   :  { %1192 = vmatprep.subr.bf16.mxu1 %v311_v29  ;;  %v228_v29 = vld [vmem:[%s3835_s1 + $0x6c0] sm:$0xff]  ;;  %v111_v58 = vld [vmem:[%s3835_s1 + $0x318] sm:$0xff]  ;;  %v2164_v31 = vld [vmem:[%s3836_s0 + $0x168] ss:$36 sps:$4 sm:$0xff]  }
  0x49   :  { %v2945_v45 = vpack.c.bf16 %v230_v30, %v228_v29  ;;  %v325_v8 = vpack.c.bf16 %v111_v58, %v109_v57  ;;  %v115_v12 = vld [vmem:[%s3835_s1 + $0x338] sm:$0xff]  ;;  %v117_v29 = vld [vmem:[%s3835_s1 + $0x348] sm:$0xff]  ;;  %v244_v38 = vld [vmem:[%s3835_s1 + $0x740] sm:$0xff] }
  0x4a   :  { %1479 = vmatpush1.bf16.msra.mxu0 %v2759_v32  ;;  %1193 = vmatpush1.bf16.msra.mxu1 %v310_v35  ;;  %v2924_v35 = vpack.c.bf16 %v231_v20, %v229_v18  ;;  %v2162_v13 = vld [vmem:[%s3836_s0 + $0x17c] ss:$36 sps:$4 sm:$0xff]   ;;  %v324_v20 = vpack.c.bf16 %v110_v9, %v108_v7  ;;  %v250_v58 = vld [vmem:[%s3835_s1 + $0x770] sm:$0xff] }
  0x4b   :  { %1480 = vmatprep.subr.bf16.mxu0 %v2771_v37  ;;  %1194 = vmatprep.subr.bf16.mxu1 %v313_v40  ;;  %v321_v40 = vpack.c.bf16 %v103_v26, %v101_v25  ;;  %v327_v25 = vpack.c.bf16 %v115_v12, %v113_v10  ;;  %v112_v26 = vld [vmem:[%s3835_s1 + $0x320] sm:$0xff]  ;;  %v119_v30 = vld [vmem:[%s3835_s1 + $0x358] sm:$0xff] }
  0x4c   :  { %1090 = vmatmul.mubr.bf16.gmra.mrb[4].mxu1 %v2140_v33  ;;  %v2153_v33 = vld [vmem:[%s3836_s0 + $0xe8] ss:$36 sps:$4 sm:$0xff]   ;;  %v2172_v9 = vld [vmem:[%s3836_s0 + $0x1fc] ss:$36 sps:$4 sm:$0xff]  }
  0x4d   :  { %1376 = vmatmul.mubr.bf16.gmra.mrb[4].mxu0 %v2141_v36  ;;  %1099 = vmatprep.mubr.bf16.mxu1 %v2142_v39  ;;  %v318_v36 = vpack.c.bf16 %v98_v23, %v96_v22  ;;  %v100_v39 = vld [vmem:[%s3835_s1 + $0x2c0] sm:$0xff]  ;;  %v245_v22 = vld [vmem:[%s3835_s1 + $0x748] sm:$0xff]  ;;  %v247_v23 = vld [vmem:[%s3835_s1 + $0x758] sm:$0xff] }
  0x4e   :  { %1481 = vmatpush1.bf16.msra.mxu0 %v2804_v49  ;;  %1385 = vmatprep.mubr.bf16.mxu0 %v2144_v42  ;;  %v105_v42 = vld [vmem:[%s3835_s1 + $0x2e8] sm:$0xff]  ;;  %v320_v47 = vpack.c.bf16 %v102_v41, %v100_v39  ;;  %v246_v39 = vld [vmem:[%s3835_s1 + $0x750] sm:$0xff]  ;;  %v252_v12 = vld [vmem:[%s3835_s1 + $0x780] sm:$0xff] }
  0x4f   :  { %1482 = vmatprep.subr.bf16.mxu0 %v2810_v51  ;;  %1195 = vmatpush1.bf16.msra.mxu1 %v312_v52  ;;  %v237_v52 = vld [vmem:[%s3835_s1 + $0x708] sm:$0xff]  ;;  %v323_v54 = vpack.c.bf16 %v107_v43, %v105_v42  ;;  %v329_v42 = vpack.c.bf16 %v119_v30, %v117_v29  ;;  %v251_v43 = vld [vmem:[%s3835_s1 + $0x778] sm:$0xff] }
  0x50   :  { %1196 = vmatprep.subr.bf16.mxu1 %v315_v56  ;;  %v106_v56 = vld [vmem:[%s3835_s1 + $0x2f0] sm:$0xff]  ;;  %v2996_v4 = vpack.c.bf16 %v239_v53, %v237_v52  ;;  %v249_v41 = vld [vmem:[%s3835_s1 + $0x768] sm:$0xff]  ;;  %v123_v52 = vld [vmem:[%s3835_s1 + $0x378] sm:$0xff] }
  0x51   :  { %v2168_v53 = vld [vmem:[%s3836_s0 + $0x1c4] ss:$36 sps:$4 sm:$0xff]   ;;  %v131_v29 = vld [vmem:[%s3835_s1 + $0x3b8] sm:$0xff] }
  0x52   :  { %1483 = vmatpush1.bf16.msra.mxu0 %v2834_v61 }
  0x53   :  { %1484 = vmatprep.subr.bf16.mxu0 %v2840_v63  ;;  %1197 = vmatpush1.bf16.msra.mxu1 %v314_v3  ;;  %v2160_v3 = vld [vmem:[%s3836_s0 + $0x16c] ss:$36 sps:$4 sm:$0xff]  }
  0x54   :  { %1100 = vmatmul.mubr.bf16.gmra.mrb[8].mxu1 %v2146_v60  ;;  %1198 = vmatprep.subr.bf16.mxu1 %v317_v6  ;;  %v2978_v60 = vpack.c.bf16 %v234_v50, %v232_v48  ;;  %v243_v6 = vld [vmem:[%s3835_s1 + $0x738] sm:$0xff]  ;;  %v121_v50 = vld [vmem:[%s3835_s1 + $0x368] sm:$0xff] }
  0x55   :  { %1386 = vmatmul.mubr.bf16.gmra.mrb[8].mxu0 %v2147_v62  ;;  %1109 = vmatprep.mubr.bf16.mxu1 %v2148_v0  ;;  %v236_v62 = vld [vmem:[%s3835_s1 + $0x700] sm:$0xff]  ;;  %v238_v0 = vld [vmem:[%s3835_s1 + $0x710] sm:$0xff]  ;;  %v3023_v18 = vpack.c.bf16 %v243_v6, %v241_v1 }
  0x56   :  { %1395 = vmatprep.mubr.bf16.mxu0 %v2150_v5  ;;  %1485 = vmatpush1.bf16.msra.mxu0 %v2876_v14  ;;  %v322_v5 = vpack.c.bf16 %v106_v56, %v104_v55  ;;  %v3017_v15 = vpack.c.bf16 %v238_v0, %v236_v62  ;;  %v2166_v48 = vld [vmem:[%s3836_s0 + $0x1b4] ss:$36 sps:$4 sm:$0xff]   ;;  %v248_v55 = vld [vmem:[%s3835_s1 + $0x760] sm:$0xff]  ;;  %v3095_v56 = vpack.c.bf16 %v251_v43, %v249_v41 }
  0x57   :  { %1486 = vmatprep.subr.bf16.mxu0 %v2882_v16  ;;  %1199 = vmatpush1.bf16.msra.mxu1 %v316_v17  ;;  %v240_v17 = vld [vmem:[%s3835_s1 + $0x720] sm:$0xff]  ;;  %v255_v62 = vld [vmem:[%s3835_s1 + $0x798] sm:$0xff]  ;;  %v331_v0 = vpack.c.bf16 %v123_v52, %v121_v50  ;;  %v2170_v6 = vld [vmem:[%s3836_s0 + $0x1b0] ss:$36 sps:$4 sm:$0xff]   ;;  %v3122_v7 = vpack.c.bf16 %v250_v58, %v248_v55 }
  0x58   :  { %1200 = vmatprep.subr.bf16.mxu1 %v319_v21  ;;  %v242_v21 = vld [vmem:[%s3835_s1 + $0x730] sm:$0xff]  ;;  %v120_v1 = vld [vmem:[%s3835_s1 + $0x360] sm:$0xff]  ;;  %v135_v50 = vld [vmem:[%s3835_s1 + $0x3d8] sm:$0xff] }
  0x59   :  { %v130_v41 = vld [vmem:[%s3835_s1 + $0x3b0] sm:$0xff]  ;;  %v2176_v52 = vld [vmem:[%s3836_s0 + $0x1f8] ss:$36 sps:$4 sm:$0xff]  }
  0x5a   :  { %1487 = vmatpush1.bf16.msra.mxu0 %v2906_v28  ;;  %v262_v55 = vld [vmem:[%s3835_s1 + $0x7d0] sm:$0xff] }
  0x5b   :  { %1488 = vmatprep.subr.bf16.mxu0 %v2924_v35  ;;  %1201 = vmatpush1.bf16.msra.mxu1 %v318_v36  ;;  %v3056_v36 = vpack.c.bf16 %v247_v23, %v245_v22  ;;  %v259_v22 = vld [vmem:[%s3835_s1 + $0x7b8] sm:$0xff]  ;;  %v124_v23 = vld [vmem:[%s3835_s1 + $0x380] sm:$0xff]  ;;  %v134_v58 = vld [vmem:[%s3835_s1 + $0x3d0] sm:$0xff] }
  0x5c   :  { %1110 = vmatmul.mubr.bf16.gmra.mrb[12].mxu1 %v2152_v27  ;;  %1202 = vmatprep.subr.bf16.mxu1 %v321_v40  ;;  %v114_v27 = vld [vmem:[%s3835_s1 + $0x330] sm:$0xff] }
  0x5d   :  { %1396 = vmatmul.mubr.bf16.gmra.mrb[12].mxu0 %v2153_v33  ;;  %1119 = vmatprep.mubr.bf16.mxu1 %v2154_v34  ;;  %v3050_v33 = vpack.c.bf16 %v242_v21, %v240_v17  ;;  %v2165_v34 = vld [vmem:[%s3836_s0 + $0x178] ss:$36 sps:$4 sm:$0xff]   ;;  %v326_v40 = vpack.c.bf16 %v114_v27, %v112_v26  ;;  %v2174_v26 = vld [vmem:[%s3836_s0 + $0x20c] ss:$36 sps:$4 sm:$0xff]  }
  0x5e   :  { %1405 = vmatprep.mubr.bf16.mxu0 %v2156_v44  ;;  %1489 = vmatpush1.bf16.msra.mxu0 %v2945_v45  ;;  %v116_v44 = vld [vmem:[%s3835_s1 + $0x340] sm:$0xff]  ;;  %v129_v27 = vld [vmem:[%s3835_s1 + $0x3a8] sm:$0xff] }
  0x5f   :  { %1490 = vmatprep.subr.bf16.mxu0 %v2948_v46  ;;  %1203 = vmatpush1.bf16.msra.mxu1 %v320_v47  ;;  %v118_v47 = vld [vmem:[%s3835_s1 + $0x350] sm:$0xff]  ;;  %v335_v43 = vpack.c.bf16 %v131_v29, %v129_v27  ;;  %v271_v27 = vld [vmem:[%s3835_s1 + $0x818] sm:$0xff] }
  0x60   :  { %1204 = vmatprep.subr.bf16.mxu1 %v323_v54  ;;  %v3089_v54 = vpack.c.bf16 %v246_v39, %v244_v38  ;;  %v328_v57 = vpack.c.bf16 %v118_v47, %v116_v44  ;;  %v128_v38 = vld [vmem:[%s3835_s1 + $0x3a0] sm:$0xff]  ;;  %v263_v44 = vld [vmem:[%s3835_s1 + $0x7d8] sm:$0xff]  ;;  %v133_v47 = vld [vmem:[%s3835_s1 + $0x3c8] sm:$0xff] }
  0x62   :  { %1491 = vmatpush1.bf16.msra.mxu0 %v2978_v60 }
  0x63   :  { %1492 = vmatprep.subr.bf16.mxu0 %v2996_v4  ;;  %1205 = vmatpush1.bf16.msra.mxu1 %v322_v5  ;;  %v127_v5 = vld [vmem:[%s3835_s1 + $0x398] sm:$0xff] }
  0x64   :  { %1120 = vmatmul.mubr.bf16.gmra.mrb[16].mxu1 %v2158_v59  ;;  %1206 = vmatprep.subr.bf16.mxu1 %v325_v8  ;;  %v253_v59 = vld [vmem:[%s3835_s1 + $0x788] sm:$0xff]  ;;  %v2171_v8 = vld [vmem:[%s3836_s0 + $0x1c0] ss:$36 sps:$4 sm:$0xff]  }
  0x65   :  { %1406 = vmatmul.mubr.bf16.gmra.mrb[16].mxu0 %v2159_v2  ;;  %1129 = vmatprep.mubr.bf16.mxu1 %v2160_v3  ;;  %v122_v2 = vld [vmem:[%s3835_s1 + $0x370] sm:$0xff]  ;;  %v125_v3 = vld [vmem:[%s3835_s1 + $0x388] sm:$0xff]  ;;  %v3131_v10 = vpack.c.bf16 %v255_v62, %v253_v59 }
  0x66   :  { %1415 = vmatprep.mubr.bf16.mxu0 %v2162_v13  ;;  %1493 = vmatpush1.bf16.msra.mxu0 %v3017_v15  ;;  %v254_v13 = vld [vmem:[%s3835_s1 + $0x790] sm:$0xff]  ;;  %v330_v17 = vpack.c.bf16 %v122_v2, %v120_v1  ;;  %v333_v21 = vpack.c.bf16 %v127_v5, %v125_v3  ;;  %v2177_v59 = vld [vmem:[%s3836_s0 + $0x208] ss:$36 sps:$4 sm:$0xff]   ;;  %v267_v3 = vld [vmem:[%s3835_s1 + $0x7f8] sm:$0xff] }
  0x67   :  { %1494 = vmatprep.subr.bf16.mxu0 %v3023_v18  ;;  %1207 = vmatpush1.bf16.msra.mxu1 %v324_v20  ;;  %v257_v20 = vld [vmem:[%s3835_s1 + $0x7a8] sm:$0xff]  ;;  %v3161_v30 = vpack.c.bf16 %v254_v13, %v252_v12  ;;  %v2180_v5 = vld [vmem:[%s3836_s0 + $0x254] ss:$36 sps:$4 sm:$0xff]   ;;  %v264_v12 = vld [vmem:[%s3835_s1 + $0x7e0] sm:$0xff] }
  0x68   :  { %1208 = vmatprep.subr.bf16.mxu1 %v327_v25  ;;  %v126_v25 = vld [vmem:[%s3835_s1 + $0x390] sm:$0xff]  ;;  %v3173_v39 = vpack.c.bf16 %v259_v22, %v257_v20  ;;  %v2178_v62 = vld [vmem:[%s3836_s0 + $0x244] ss:$36 sps:$4 sm:$0xff]  }
  0x69   :  { %v265_v2 = vld [vmem:[%s3835_s1 + $0x7e8] sm:$0xff]  ;;  %v136_v22 = vld [vmem:[%s3835_s1 + $0x3e0] sm:$0xff] }
  0x6a   :  { %1495 = vmatpush1.bf16.msra.mxu0 %v3050_v33 }
  0x6b   :  { %1496 = vmatprep.subr.bf16.mxu0 %v3056_v36  ;;  %1209 = vmatpush1.bf16.msra.mxu1 %v326_v40  ;;  %v332_v40 = vpack.c.bf16 %v126_v25, %v124_v23  ;;  %v138_v25 = vld [vmem:[%s3835_s1 + $0x3f0] sm:$0xff] }
  0x6c   :  { %1130 = vmatmul.mubr.bf16.gmra.mrb[20].mxu1 %v2164_v31  ;;  %1210 = vmatprep.subr.bf16.mxu1 %v329_v42  ;;  %v256_v31 = vld [vmem:[%s3835_s1 + $0x7a0] sm:$0xff]  ;;  %v261_v42 = vld [vmem:[%s3835_s1 + $0x7c8] sm:$0xff] }
  0x6d   :  { %1416 = vmatmul.mubr.bf16.gmra.mrb[20].mxu0 %v2165_v34  ;;  %1139 = vmatprep.mubr.bf16.mxu1 %v2166_v48  ;;  %v258_v34 = vld [vmem:[%s3835_s1 + $0x7b0] sm:$0xff]  ;;  %v260_v48 = vld [vmem:[%s3835_s1 + $0x7c0] sm:$0xff]  ;;  %v3215_v1 = vpack.c.bf16 %v263_v44, %v261_v42  ;;  %v2189_v44 = vld [vmem:[%s3836_s0 + $0x298] ss:$36 sps:$4 sm:$0xff]  }
  0x6e   :  { %1425 = vmatprep.mubr.bf16.mxu0 %v2168_v53  ;;  %1497 = vmatpush1.bf16.msra.mxu0 %v3089_v54  ;;  %v3197_v53 = vpack.c.bf16 %v258_v34, %v256_v31  ;;  %v3236_v13 = vpack.c.bf16 %v262_v55, %v260_v48  ;;  %v338_v31 = vpack.c.bf16 %v138_v25, %v136_v22  ;;  %v2186_v42 = vld [vmem:[%s3836_s0 + $0x29c] ss:$36 sps:$4 sm:$0xff]   ;;  %v2192_v48 = vld [vmem:[%s3836_s0 + $0x2e4] ss:$36 sps:$4 sm:$0xff]   ;;  %v2216_v25 = vld [vmem:[%s3836_s0 + $0xf4] ss:$36 sps:$4 sm:$0xff]  }
  0x6f   :  { %1498 = vmatprep.subr.bf16.mxu0 %v3095_v56  ;;  %1211 = vmatpush1.bf16.msra.mxu1 %v328_v57  ;;  %v132_v57 = vld [vmem:[%s3835_s1 + $0x3c0] sm:$0xff] }
  0x70   :  { %1212 = vmatprep.subr.bf16.mxu1 %v331_v0  ;;  %v334_v0 = vpack.c.bf16 %v130_v41, %v128_v38  ;;  %v336_v20 = vpack.c.bf16 %v134_v58, %v132_v57  ;;  %v2182_v38 = vld [vmem:[%s3836_s0 + $0x240] ss:$36 sps:$4 sm:$0xff]   ;;  %v2184_v41 = vld [vmem:[%s3836_s0 + $0x28c] ss:$36 sps:$4 sm:$0xff]  }
  0x71   :  { %v2201_v55 = vld [vmem:[%s3836_s0 + $0x1c] ss:$36 sps:$4 sm:$0xff]   ;;  %v2196_v57 = vld [vmem:[%s3836_s0 + $0x8] ss:$36 sps:$4 sm:$0xff]  }
  0x72   :  { %1499 = vmatpush1.bf16.msra.mxu0 %v3122_v7  ;;  %v268_v58 = vld [vmem:[%s3835_s1 + $0x800] sm:$0xff] }
  0x73   :  { %1500 = vmatprep.subr.bf16.mxu0 %v3131_v10  ;;  %1213 = vmatpush1.bf16.msra.mxu1 %v330_v17  ;;  %v266_v17 = vld [vmem:[%s3835_s1 + $0x7f0] sm:$0xff]  ;;  %v2207_v22 = vld [vmem:[%s3836_s0 + $0x60] ss:$36 sps:$4 sm:$0xff]  }
  0x74   :  { %1140 = vmatmul.mubr.bf16.gmra.mrb[24].mxu1 %v2170_v6  ;;  %1214 = vmatprep.subr.bf16.mxu1 %v333_v21  ;;  %v337_v6 = vpack.c.bf16 %v135_v50, %v133_v47  ;;  %v3242_v21 = vpack.c.bf16 %v267_v3, %v265_v2  ;;  %v3257_v29 = vpack.c.bf16 %v266_v17, %v264_v12  ;;  %v2190_v47 = vld [vmem:[%s3836_s0 + $0x2d4] ss:$36 sps:$4 sm:$0xff]   ;;  %v2195_v50 = vld [vmem:[%s3836_s0 + $0x2e0] ss:$36 sps:$4 sm:$0xff]   ;;  %v273_v2 = vld [vmem:[%s3835_s1 + $0x828] sm:$0xff] }
  0x75   :  { %1426 = vmatmul.mubr.bf16.gmra.mrb[24].mxu0 %v2171_v8  ;;  %1149 = vmatprep.mubr.bf16.mxu1 %v2172_v9  ;;  %v137_v8 = vld [vmem:[%s3835_s1 + $0x3e8] sm:$0xff]  ;;  %v139_v9 = vld [vmem:[%s3835_s1 + $0x3f8] sm:$0xff] }
  0x76   :  { %1435 = vmatprep.mubr.bf16.mxu0 %v2174_v26  ;;  %1501 = vmatpush1.bf16.msra.mxu0 %v3161_v30  ;;  %v339_v23 = vpack.c.bf16 %v139_v9, %v137_v8  ;;  %v269_v26 = vld [vmem:[%s3835_s1 + $0x808] sm:$0xff]  ;;  %v272_v8 = vld [vmem:[%s3835_s1 + $0x820] sm:$0xff]  ;;  %v274_v9 = vld [vmem:[%s3835_s1 + $0x830] sm:$0xff] }
  0x77   :  { %1502 = vmatprep.subr.bf16.mxu0 %v3173_v39  ;;  %1215 = vmatpush1.bf16.msra.mxu1 %v332_v40  ;;  %v405_v34 = vpack.c.bf16 %v271_v27, %v269_v26  ;;  %v2183_v40 = vld [vmem:[%s3836_s0 + $0x250] ss:$36 sps:$4 sm:$0xff]   ;;  %v2204_v3 = vld [vmem:[%s3836_s0 + $0x64] ss:$36 sps:$4 sm:$0xff]   ;;  %v406_v17 = vpack.c.bf16 %v274_v9, %v272_v8 }
  0x78   :  { %1216 = vmatprep.subr.bf16.mxu1 %v335_v43  ;;  %v2188_v43 = vld [vmem:[%s3836_s0 + $0x288] ss:$36 sps:$4 sm:$0xff]  }
  0x79   :  { %v2254_v26 = vld [vmem:[%s3836_s0 + $0x1cc] ss:$36 sps:$4 sm:$0xff]  }
  0x7a   :  { %1503 = vmatpush1.bf16.msra.mxu0 %v3197_v53  ;;  %v2252_v27 = vld [vmem:[%s3836_s0 + $0x1c8] ss:$36 sps:$4 sm:$0xff]  }
  0x7b   :  { %1217 = vmatpush1.bf16.msra.mxu1 %v334_v0  ;;  %1504 = vmatprep.subr.bf16.mxu0 %v3215_v1  ;;  %v2202_v0 = vld [vmem:[%s3836_s0 + $0x54] ss:$36 sps:$4 sm:$0xff]  }
  0x7c   :  { %1150 = vmatmul.mubr.bf16.gmra.mrb[28].mxu1 %v2176_v52  ;;  %1218 = vmatprep.subr.bf16.mxu1 %v337_v6  ;;  %v2198_v52 = vld [vmem:[%s3836_s0 + $0xc] ss:$36 sps:$4 sm:$0xff]  }
  0x7d   :  { %1436 = vmatmul.mubr.bf16.gmra.mrb[28].mxu0 %v2177_v59  ;;  %1159 = vmatprep.mubr.bf16.mxu1 %v2178_v62  ;;  %v2199_v59 = vld [vmem:[%s3836_s0 + $0x18] ss:$36 sps:$4 sm:$0xff]   ;;  %v270_v62 = vld [vmem:[%s3835_s1 + $0x810] sm:$0xff] }
  0x7e   :  { %1445 = vmatprep.mubr.bf16.mxu0 %v2180_v5  ;;  %1505 = vmatpush1.bf16.msra.mxu0 %v3236_v13  ;;  %v275_v5 = vld [vmem:[%s3835_s1 + $0x838] sm:$0xff]  ;;  %v404_v6 = vpack.c.bf16 %v270_v62, %v268_v58 }
  0x7f   :  { %1219 = vmatpush1.bf16.msra.mxu1 %v336_v20  ;;  %1506 = vmatprep.subr.bf16.mxu0 %v3242_v21  ;;  %v407_v12 = vpack.c.bf16 %v275_v5, %v273_v2  ;;  %v2206_v20 = vld [vmem:[%s3836_s0 + $0x50] ss:$36 sps:$4 sm:$0xff]  }
  0x80   :  { %1220 = vmatprep.subr.bf16.mxu1 %v339_v23  ;;  %v2208_v23 = vld [vmem:[%s3836_s0 + $0x9c] ss:$36 sps:$4 sm:$0xff]  }
  0x82   :  { %1507 = vmatpush1.bf16.msra.mxu0 %v3257_v29 }
  0x83   :  { %1221 = vmatpush1.bf16.msra.mxu1 %v338_v31  ;;  %1619 = vmatprep.subr.bf16.mxu0 %v405_v34  ;;  %v2256_v31 = vld [vmem:[%s3836_s0 + $0x214] ss:$36 sps:$4 sm:$0xff]  }
  0x84   :  { %1160 = vmatmul.mubr.bf16.gmra.mrb[32].mxu1 %v2182_v38  ;;  %1921 = vmatprep.subr.bf16.mxu1 %v2703_v11  ;;  %v2194_v11 = vld [vmem:[%s3836_s0 + $0x2d0] ss:$36 sps:$4 sm:$0xff]  }
  0x85   :  { %1446 = vmatmul.mubr.bf16.gmra.mrb[32].mxu0 %v2183_v40  ;;  %1169 = vmatprep.mubr.bf16.mxu1 %v2184_v41  ;;  %v2258_v34 = vld [vmem:[%s3836_s0 + $0x210] ss:$36 sps:$4 sm:$0xff]   ;;  %v2260_v40 = vld [vmem:[%s3836_s0 + $0x25c] ss:$36 sps:$4 sm:$0xff]  }
  0x86   :  { %1455 = vmatprep.mubr.bf16.mxu0 %v2186_v42  ;;  %v2259_v38 = vld [vmem:[%s3836_s0 + $0x1d0] ss:$36 sps:$4 sm:$0xff]   ;;  %v2262_v41 = vld [vmem:[%s3836_s0 + $0x258] ss:$36 sps:$4 sm:$0xff]  }
  0x87   :  { %v2263_v42 = vld [vmem:[%s3836_s0 + $0x218] ss:$36 sps:$4 sm:$0xff]  }
  0x8c   :  { %1170 = vmatmul.mubr.bf16.gmra.mrb[36].mxu1 %v2188_v43  ;;  %v2264_v43 = vld [vmem:[%s3836_s0 + $0x2a4] ss:$36 sps:$4 sm:$0xff]  }
  0x8d   :  { %1456 = vmatmul.mubr.bf16.gmra.mrb[36].mxu0 %v2189_v44  ;;  %1179 = vmatprep.mubr.bf16.mxu1 %v2190_v47  ;;  %v2266_v44 = vld [vmem:[%s3836_s0 + $0x2a0] ss:$36 sps:$4 sm:$0xff]  }
  0x8e   :  { %1465 = vmatprep.mubr.bf16.mxu0 %v2192_v48  ;;  %v2267_v47 = vld [vmem:[%s3836_s0 + $0x260] ss:$36 sps:$4 sm:$0xff]   ;;  %v2268_v48 = vld [vmem:[%s3836_s0 + $0x2ec] ss:$36 sps:$4 sm:$0xff]  }
  0x94   :  { %1180 = vmatmul.mubr.bf16.gmra.mrb[40].mxu1 %v2194_v11  ;;  %v2270_v11 = vld [vmem:[%s3836_s0 + $0x2e8] ss:$36 sps:$4 sm:$0xff]  }
  0x95   :  { %1466 = vmatmul.mubr.bf16.gmra.mrb[40].mxu0 %v2195_v50  ;;  %1222 = vmatprep.mubr.bf16.mxu1 %v2198_v52  ;;  %v2271_v50 = vld [vmem:[%s3836_s0 + $0x2a8] ss:$36 sps:$4 sm:$0xff]   ;;  %v2272_v52 = vld [vmem:[%s3836_s0 + $0x2f0] ss:$36 sps:$4 sm:$0xff]  }
  0x96   :  { %1508 = vmatprep.mubr.bf16.mxu0 %v2201_v55 }
  0x9c   :  { %1223 = vmatmul.mubr.bf16.vlgmr.msra.gmra.mrb[0].mxu1 %v2196_v57 }
  0x9d   :  { %1509 = vmatmul.mubr.bf16.vlgmr.msra.gmra.mrb[0].mxu0 %v2199_v59  ;;  %1232 = vmatprep.mubr.bf16.mxu1 %v2202_v0 }
  0x9e   :  { %1620 = vmatpush1.bf16.msra.mxu0 %v404_v6  ;;  %1937 = vmatpush1.bf16.msra.mxu1 %v2726_v19  ;;  %v2210_v19 = vld [vmem:[%s3836_s0 + $0xac] ss:$36 sps:$4 sm:$0xff]  }
  0x9f   :  { %1518 = vmatprep.mubr.bf16.mxu0 %v2204_v3  ;;  %1922 = vmatprep.subr.bf16.mxu1 %v2738_v24  ;;  %v2212_v24 = vld [vmem:[%s3836_s0 + $0x98] ss:$36 sps:$4 sm:$0xff]  }
  0xa0   :  { %1621 = vmatprep.subr.bf16.mxu0 %v407_v12 }
  0xa2   :  { %1938 = vmatpush1.bf16.msra.mxu1 %v2759_v32  ;;  %1622 = vmatpush1.bf16.msra.mxu0 %v406_v17  ;;  %v2213_v32 = vld [vmem:[%s3836_s0 + $0xa8] ss:$36 sps:$4 sm:$0xff]  }
  0xa3   :  { %1923 = vmatprep.subr.bf16.mxu1 %v2771_v37  ;;  %v2214_v37 = vld [vmem:[%s3836_s0 + $0xe4] ss:$36 sps:$4 sm:$0xff]  }
  0xa4   :  { %1233 = vmatmul.mubr.bf16.gmra.mrb[4].mxu1 %v2206_v20 }
  0xa5   :  { %1519 = vmatmul.mubr.bf16.gmra.mrb[4].mxu0 %v2207_v22  ;;  %1242 = vmatprep.mubr.bf16.mxu1 %v2208_v23 }
  0xa6   :  { %1528 = vmatprep.mubr.bf16.mxu0 %v2210_v19  ;;  %1939 = vmatpush1.bf16.msra.mxu1 %v2804_v49  ;;  %v2218_v49 = vld [vmem:[%s3836_s0 + $0xe0] ss:$36 sps:$4 sm:$0xff]  }
  0xa7   :  { %1924 = vmatprep.subr.bf16.mxu1 %v2810_v51  ;;  %v2219_v51 = vld [vmem:[%s3836_s0 + $0xf0] ss:$36 sps:$4 sm:$0xff]  }
  0xaa   :  { %1940 = vmatpush1.bf16.msra.mxu1 %v2834_v61  ;;  %v2220_v61 = vld [vmem:[%s3836_s0 + $0x12c] ss:$36 sps:$4 sm:$0xff]  }
  0xab   :  { %1925 = vmatprep.subr.bf16.mxu1 %v2840_v63  ;;  %v2222_v63 = vld [vmem:[%s3836_s0 + $0x13c] ss:$36 sps:$4 sm:$0xff]  }
  0xac   :  { %1243 = vmatmul.mubr.bf16.gmra.mrb[8].mxu1 %v2212_v24 }
  0xad   :  { %1529 = vmatmul.mubr.bf16.gmra.mrb[8].mxu0 %v2213_v32  ;;  %1252 = vmatprep.mubr.bf16.mxu1 %v2214_v37 }
  0xae   :  { %1538 = vmatprep.mubr.bf16.mxu0 %v2216_v25  ;;  %1941 = vmatpush1.bf16.msra.mxu1 %v2876_v14  ;;  %v2224_v14 = vld [vmem:[%s3836_s0 + $0x128] ss:$36 sps:$4 sm:$0xff]  }
  0xaf   :  { %1926 = vmatprep.subr.bf16.mxu1 %v2882_v16  ;;  %v2225_v16 = vld [vmem:[%s3836_s0 + $0x138] ss:$36 sps:$4 sm:$0xff]  }
  0xb2   :  { %1942 = vmatpush1.bf16.msra.mxu1 %v2906_v28  ;;  %v2226_v28 = vld [vmem:[%s3836_s0 + $0x174] ss:$36 sps:$4 sm:$0xff]  }
  0xb3   :  { %1927 = vmatprep.subr.bf16.mxu1 %v2924_v35  ;;  %v2228_v35 = vld [vmem:[%s3836_s0 + $0x184] ss:$36 sps:$4 sm:$0xff]  }
  0xb4   :  { %1253 = vmatmul.mubr.bf16.gmra.mrb[12].mxu1 %v2218_v49 }
  0xb5   :  { %1539 = vmatmul.mubr.bf16.gmra.mrb[12].mxu0 %v2219_v51  ;;  %1262 = vmatprep.mubr.bf16.mxu1 %v2220_v61 }
  0xb6   :  { %1548 = vmatprep.mubr.bf16.mxu0 %v2222_v63  ;;  %1943 = vmatpush1.bf16.msra.mxu1 %v2945_v45  ;;  %v2230_v45 = vld [vmem:[%s3836_s0 + $0x170] ss:$36 sps:$4 sm:$0xff]  }
  0xb7   :  { %1928 = vmatprep.subr.bf16.mxu1 %v2948_v46  ;;  %v2231_v46 = vld [vmem:[%s3836_s0 + $0x180] ss:$36 sps:$4 sm:$0xff]  }
  0xba   :  { %1944 = vmatpush1.bf16.msra.mxu1 %v2978_v60  ;;  %v2232_v60 = vld [vmem:[%s3836_s0 + $0x1bc] ss:$36 sps:$4 sm:$0xff]  }
  0xbb   :  { %1929 = vmatprep.subr.bf16.mxu1 %v2996_v4  ;;  %v2273_v4 = vmov 0  }
  0xbc   :  { %1263 = vmatmul.mubr.bf16.gmra.mrb[16].mxu1 %v2224_v14 }
  0xbd   :  { %1549 = vmatmul.mubr.bf16.gmra.mrb[16].mxu0 %v2225_v16  ;;  %1272 = vmatprep.mubr.bf16.mxu1 %v2226_v28 }
  0xbe   :  { %1558 = vmatprep.mubr.bf16.mxu0 %v2228_v35  ;;  %1945 = vmatpush1.bf16.msra.mxu1 %v3017_v15  ;;  %v2234_v15 = vld [vmem:[%s3836_s0 + $0x1b8] ss:$36 sps:$4 sm:$0xff]  }
  0xbf   :  { %1930 = vmatprep.subr.bf16.mxu1 %v3023_v18  ;;  %v2235_v18 = vld [vmem:[%s3836_s0 + $0x20] ss:$36 sps:$4 sm:$0xff]  }
  0xc2   :  { %1946 = vmatpush1.bf16.msra.mxu1 %v3050_v33  ;;  %v2236_v33 = vld [vmem:[%s3836_s0 + $0x204] ss:$36 sps:$4 sm:$0xff]  }
  0xc3   :  { %1931 = vmatprep.subr.bf16.mxu1 %v3056_v36  ;;  %v2238_v36 = vld [vmem:[%s3836_s0 + $0x200] ss:$36 sps:$4 sm:$0xff]  }
  0xc4   :  { %1273 = vmatmul.mubr.bf16.gmra.mrb[20].mxu1 %v2230_v45 }
  0xc5   :  { %1559 = vmatmul.mubr.bf16.gmra.mrb[20].mxu0 %v2231_v46  ;;  %1282 = vmatprep.mubr.bf16.mxu1 %v2232_v60 }
  0xc6   :  { %1651 = vmatprep.mubr.bf16.mxu0 %v2273_v4  ;;  %1947 = vmatpush1.bf16.msra.mxu1 %v3089_v54  ;;  %v2239_v54 = vld [vmem:[%s3836_s0 + $0x68] ss:$36 sps:$4 sm:$0xff]  }
  0xc7   :  { %1932 = vmatprep.subr.bf16.mxu1 %v3095_v56  ;;  %v2240_v56 = vld [vmem:[%s3836_s0 + $0x24c] ss:$36 sps:$4 sm:$0xff]  }
  0xca   :  { %1948 = vmatpush1.bf16.msra.mxu1 %v3122_v7  ;;  %v2242_v7 = vld [vmem:[%s3836_s0 + $0x248] ss:$36 sps:$4 sm:$0xff]  }
  0xcb   :  { %1933 = vmatprep.subr.bf16.mxu1 %v3131_v10  ;;  %v2243_v10 = vld [vmem:[%s3836_s0 + $0xb0] ss:$36 sps:$4 sm:$0xff]  }
  0xcc   :  { %1283 = vmatmul.mubr.bf16.gmra.mrb[24].mxu1 %v2234_v15 }
  0xcd   :  { %1910 = vmatmul.mubr.msk.bf16.vlgmr.msra.gmra.mrb[0].mxu0 %vm1013_vm0, %v2235_v18  ;;  %1292 = vmatprep.mubr.bf16.mxu1 %v2236_v33 }
  0xce   :  { %1661 = vmatprep.mubr.bf16.mxu0 %v2273_v4  ;;  %1949 = vmatpush1.bf16.msra.mxu1 %v3161_v30  ;;  %v2244_v30 = vld [vmem:[%s3836_s0 + $0x294] ss:$36 sps:$4 sm:$0xff]  }
  0xcf   :  { %1934 = vmatprep.subr.bf16.mxu1 %v3173_v39  ;;  %v2246_v39 = vld [vmem:[%s3836_s0 + $0x290] ss:$36 sps:$4 sm:$0xff]  }
  0xd2   :  { %1950 = vmatpush1.bf16.msra.mxu1 %v3197_v53  ;;  %v2247_v53 = vld [vmem:[%s3836_s0 + $0xf8] ss:$36 sps:$4 sm:$0xff]  }
  0xd3   :  { %1935 = vmatprep.subr.bf16.mxu1 %v3215_v1  ;;  %v2248_v1 = vld [vmem:[%s3836_s0 + $0x2dc] ss:$36 sps:$4 sm:$0xff]  }
  0xd4   :  { %1293 = vmatmul.mubr.bf16.gmra.mrb[28].mxu1 %v2238_v36 }
  0xd5   :  { %1911 = vmatmul.mubr.msk.bf16.gmra.mrb[4].mxu0 %vm1013_vm0, %v2239_v54  ;;  %1302 = vmatprep.mubr.bf16.mxu1 %v2240_v56 }
  0xd6   :  { %1671 = vmatprep.mubr.bf16.mxu0 %v2273_v4  ;;  %1951 = vmatpush1.bf16.msra.mxu1 %v3236_v13  ;;  %v2250_v13 = vld [vmem:[%s3836_s0 + $0x2d8] ss:$36 sps:$4 sm:$0xff]  }
  0xd7   :  { %1936 = vmatprep.subr.bf16.mxu1 %v3242_v21  ;;  %v2251_v21 = vld [vmem:[%s3836_s0 + $0x140] ss:$36 sps:$4 sm:$0xff]  }
  0xda   :  { %1952 = vmatpush1.bf16.msra.mxu1 %v3257_v29  ;;  %v2255_v29 = vld [vmem:[%s3836_s0 + $0x188] ss:$36 sps:$4 sm:$0xff]  }
  0xdc   :  { %1303 = vmatmul.mubr.bf16.gmra.mrb[32].mxu1 %v2242_v7 }
  0xdd   :  { %1912 = vmatmul.mubr.msk.bf16.gmra.mrb[8].mxu0 %vm1013_vm0, %v2243_v10  ;;  %1312 = vmatprep.mubr.bf16.mxu1 %v2244_v30 }
  0xde   :  { %1681 = vmatprep.mubr.bf16.mxu0 %v2273_v4 }
  0xe4   :  { %1313 = vmatmul.mubr.bf16.gmra.mrb[36].mxu1 %v2246_v39 }
  0xe5   :  { %1913 = vmatmul.mubr.msk.bf16.gmra.mrb[12].mxu0 %vm1013_vm0, %v2247_v53  ;;  %1322 = vmatprep.mubr.bf16.mxu1 %v2248_v1 }
  0xe6   :  { %1691 = vmatprep.mubr.bf16.mxu0 %v2273_v4 }
  0xec   :  { %1323 = vmatmul.mubr.bf16.gmra.mrb[40].mxu1 %v2250_v13 }
  0xed   :  { %1914 = vmatmul.mubr.msk.bf16.gmra.mrb[16].mxu0 %vm1013_vm0, %v2251_v21  ;;  %1568 = vmatprep.mubr.bf16.mxu1 %v2254_v26 }
  0xee   :  { %1701 = vmatprep.mubr.bf16.mxu0 %v2273_v4 }
  0xf4   :  { %1569 = vmatmul.mubr.bf16.vlgmr.msra.gmra.mrb[44].mxu1 %v2252_v27 }
  0xf5   :  { %1915 = vmatmul.mubr.msk.bf16.gmra.mrb[20].mxu0 %vm1013_vm0, %v2255_v29  ;;  %1578 = vmatprep.mubr.bf16.mxu1 %v2256_v31 }
  0xf6   :  { %1711 = vmatprep.mubr.bf16.mxu0 %v2273_v4 }
  0xfc   :  { %1579 = vmatmul.mubr.bf16.gmra.mrb[48].mxu1 %v2258_v34 }
  0xfd   :  { %1916 = vmatmul.mubr.msk.bf16.gmra.mrb[44].mxu0 %vm1013_vm0, %v2259_v38  ;;  %1588 = vmatprep.mubr.bf16.mxu1 %v2260_v40 }
  0xfe   :  { %1721 = vmatprep.mubr.bf16.mxu0 %v2273_v4 }
 0x104   :  { %1589 = vmatmul.mubr.bf16.gmra.mrb[52].mxu1 %v2262_v41 }
 0x105   :  { %1917 = vmatmul.mubr.msk.bf16.gmra.mrb[48].mxu0 %vm1013_vm0, %v2263_v42  ;;  %1598 = vmatprep.mubr.bf16.mxu1 %v2264_v43 }
 0x106   :  { %1731 = vmatprep.mubr.bf16.mxu0 %v2273_v4 }
 0x10c   :  { %1599 = vmatmul.mubr.bf16.gmra.mrb[56].mxu1 %v2266_v44 }
 0x10d   :  { %1918 = vmatmul.mubr.msk.bf16.gmra.mrb[52].mxu0 %vm1013_vm0, %v2267_v47  ;;  %1608 = vmatprep.mubr.bf16.mxu1 %v2268_v48 }
 0x10e   :  { %1741 = vmatprep.mubr.bf16.mxu0 %v2273_v4 }
 0x114   :  { %1609 = vmatmul.mubr.bf16.gmra.mrb[60].mxu1 %v2270_v11 }
 0x115   :  { %1919 = vmatmul.mubr.msk.bf16.gmra.mrb[56].mxu0 %vm1013_vm0, %v2271_v50 }
 0x116   :  { %1751 = vmatprep.mubr.bf16.mxu0 %v2273_v4 }
 0x11d   :  { %1920 = vmatmul.mubr.msk.bf16.gmra.mrb[60].mxu0 %vm1013_vm0, %v2272_v52 }
 0x148   :  { %v1427_v55 = vpop.f32.mrb[24].mxu0 }
 0x149   :  { %v1429_v57 = vpop.f32.mrb[25].mxu0 }
 0x14a   :  { %v1431_v58 = vpop.f32.mrb[26].mxu0 }
 0x14b   :  { %v1433_v59 = vpop.f32.mrb[27].mxu0 }
 0x150   :  { %v3528_v62 = vpop.f32.mrb[28].mxu0 }
 0x151   :  { %v3530_v0 = vpop.f32.mrb[29].mxu0 }
 0x152   :  { %v3532_v2 = vpop.f32.mrb[30].mxu0 }
 0x153   :  { %v3534_v3 = vpop.f32.mrb[31].mxu0 }
 0x158   :  { %v3536_v5 = vpop.f32.mrb[32].mxu0 }
 0x159   :  { %v3538_v6 = vpop.f32.mrb[33].mxu0 }
 0x15a   :  { %v3540_v8 = vpop.f32.mrb[34].mxu0 }
 0x15b   :  { %v3542_v9 = vpop.f32.mrb[35].mxu0 }
 0x160   :  { %v3544_v12 = vpop.f32.mrb[36].mxu0 }
 0x161   :  { %v3546_v17 = vpop.f32.mrb[37].mxu0 }
 0x162   :  { %v3548_v20 = vpop.f32.mrb[38].mxu0 }
 0x163   :  { %v3550_v22 = vpop.f32.mrb[39].mxu0 }
 0x168   :  { %v3552_v23 = vpop.f32.mrb[40].mxu0 }
 0x169   :  { %v3554_v19 = vpop.f32.mrb[41].mxu0 }
 0x16a   :  { %v3556_v24 = vpop.f32.mrb[42].mxu0 }
 0x16b   :  { %v3558_v32 = vpop.f32.mrb[43].mxu0 }
 0x16f   :  { %v1224_v37 = vpop.f32.mrb[0].mxu1 }
 0x170   :  { %v1226_v25 = vpop.f32.mrb[1].mxu1 }
 0x171   :  { %v1228_v49 = vpop.f32.mrb[2].mxu1 }
 0x172   :  { %v1230_v51 = vpop.f32.mrb[3].mxu1 }
 0x177   :  { %v1234_v61 = vpop.f32.mrb[4].mxu1 }
 0x178   :  { %v1236_v63 = vpop.f32.mrb[5].mxu1 }
 0x179   :  { %v1238_v14 = vpop.f32.mrb[6].mxu1 }
 0x17a   :  { %v1240_v16 = vpop.f32.mrb[7].mxu1 }
 0x17f   :  { %v1244_v28 = vpop.f32.mrb[8].mxu1 }
 0x180   :  { %v3560_v35 = vpop.f32.mrb[9].mxu1 }
 0x181   :  { %v3562_v45 = vpop.f32.mrb[10].mxu1 }
 0x182   :  { %v3564_v46 = vpop.f32.mrb[11].mxu1 }
 0x187   :  { %v3566_v60 = vpop.f32.mrb[12].mxu1 }
 0x188   :  { %v3568_v4 = vpop.f32.mrb[13].mxu1 }
 0x189   :  { %v3570_v15 = vpop.f32.mrb[14].mxu1 }
 0x18a   :  { %v3572_v18 = vpop.f32.mrb[15].mxu1 }
 0x18f   :  { %v3574_v33 = vpop.f32.mrb[16].mxu1 }
 0x190   :  { %v3576_v36 = vpop.f32.mrb[17].mxu1 }
 0x191   :  { %v3578_v54 = vpop.f32.mrb[18].mxu1 }
 0x192   :  { %v3580_v56 = vpop.f32.mrb[19].mxu1 }
 0x197   :  { %v3582_v7 = vpop.f32.mrb[20].mxu1 }
 0x198   :  { %v3584_v10 = vpop.f32.mrb[21].mxu1 }
 0x199   :  { %v3586_v30 = vpop.f32.mrb[22].mxu1 }
 0x19a   :  { %v3588_v39 = vpop.f32.mrb[23].mxu1 }
 0x19f   :  { %v1284_v53 = vpop.f32.mrb[24].mxu1 }
 0x1a0   :  { %v3590_v1 = vadd.f32 %v1427_v55, %v1284_v53  ;;  %v1653_v13 = vpop.f32.mrb[0].mxu0  ;;  %v1286_v21 = vpop.f32.mrb[25].mxu1 }
 0x1a1   :  { %v1953_v26 = vadd.f32 %v1653_v13, %v1224_v37  ;;  %v3592_v27 = vadd.f32 %v1429_v57, %v1286_v21  ;;  %v1655_v29 = vpop.f32.mrb[1].mxu0  ;;  %v1288_v31 = vpop.f32.mrb[26].mxu1 }
 0x1a2   :  { %v1954_v34 = vadd.f32 %v1655_v29, %v1226_v25  ;;  %v3594_v38 = vadd.f32 %v1431_v58, %v1288_v31  ;;  %v1657_v40 = vpop.f32.mrb[2].mxu0  ;;  %v1290_v41 = vpop.f32.mrb[27].mxu1 }
 0x1a3   :  { %1762 = vst [vmem:[%s3837_s2] sm:$0xff] %v1953_v26  ;;  %v1955_v42 = vadd.f32 %v1657_v40, %v1228_v49  ;;  %v3599_v43 = vadd.f32 %v1433_v59, %v1290_v41  ;;  %v1659_v44 = vpop.f32.mrb[3].mxu0 }
 0x1a4   :  { %1764 = vst.msk [vmem:[%s3837_s2 + $0x8] sm:$0xff] %vm1763_vm1, %v1954_v34  ;;  %v1956_v47 = vadd.f32 %v1659_v44, %v1230_v51 }
 0x1a5   :  { %1765 = vst [vmem:[%s3837_s2 + $0x10] sm:$0xff] %v1955_v42 }
 0x1a6   :  { %1766 = vst.msk [vmem:[%s3837_s2 + $0x18] sm:$0xff] %vm1763_vm1, %v1956_v47 }
 0x1a7   :  { %v1294_v48 = vpop.f32.mrb[28].mxu1 }
 0x1a8   :  { %v3613_v11 = vadd.f32 %v3528_v62, %v1294_v48  ;;  %v1663_v50 = vpop.f32.mrb[4].mxu0  ;;  %v1296_v52 = vpop.f32.mrb[29].mxu1 }
 0x1a9   :  { %v1957_v55 = vadd.f32 %v1663_v50, %v1234_v61  ;;  %v3616_v57 = vadd.f32 %v3530_v0, %v1296_v52  ;;  %v1665_v58 = vpop.f32.mrb[5].mxu0  ;;  %v1298_v59 = vpop.f32.mrb[30].mxu1 }
 0x1aa   :  { %v1958_v37 = vadd.f32 %v1665_v58, %v1236_v63  ;;  %v3619_v25 = vadd.f32 %v3532_v2, %v1298_v59  ;;  %v1667_v49 = vpop.f32.mrb[6].mxu0  ;;  %v1300_v51 = vpop.f32.mrb[31].mxu1 }
 0x1ab   :  { %1767 = vst [vmem:[%s3837_s2 + $0x20] sm:$0xff] %v1957_v55  ;;  %v1959_v62 = vadd.f32 %v1667_v49, %v1238_v14  ;;  %v3625_v53 = vadd.f32 %v3534_v3, %v1300_v51  ;;  %v1669_v61 = vpop.f32.mrb[7].mxu0 }
 0x1ac   :  { %1768 = vst.msk [vmem:[%s3837_s2 + $0x28] sm:$0xff] %vm1763_vm1, %v1958_v37  ;;  %v1960_v0 = vadd.f32 %v1669_v61, %v1240_v16 }
 0x1ad   :  { %1769 = vst [vmem:[%s3837_s2 + $0x30] sm:$0xff] %v1959_v62 }
 0x1ae   :  { %1770 = vst.msk [vmem:[%s3837_s2 + $0x38] sm:$0xff] %vm1763_vm1, %v1960_v0 }
 0x1af   :  { %v1304_v2 = vpop.f32.mrb[32].mxu1 }
 0x1b0   :  { %v3639_v3 = vadd.f32 %v3536_v5, %v1304_v2  ;;  %v1673_v63 = vpop.f32.mrb[8].mxu0  ;;  %v1306_v14 = vpop.f32.mrb[33].mxu1 }
 0x1b1   :  { %v1961_v13 = vadd.f32 %v1673_v63, %v1244_v28  ;;  %v3642_v21 = vadd.f32 %v3538_v6, %v1306_v14  ;;  %v1675_v16 = vpop.f32.mrb[9].mxu0  ;;  %v1308_v26 = vpop.f32.mrb[34].mxu1 }
 0x1b2   :  { %v1962_v29 = vadd.f32 %v1675_v16, %v3560_v35  ;;  %v3646_v31 = vadd.f32 %v3540_v8, %v1308_v26  ;;  %v1677_v34 = vpop.f32.mrb[10].mxu0  ;;  %v1310_v40 = vpop.f32.mrb[35].mxu1 }
 0x1b3   :  { %1771 = vst [vmem:[%s3837_s2 + $0x40] sm:$0xff] %v1961_v13  ;;  %v1963_v5 = vadd.f32 %v1677_v34, %v3562_v45  ;;  %v3653_v28 = vadd.f32 %v3542_v9, %v1310_v40  ;;  %v1679_v6 = vpop.f32.mrb[11].mxu0 }
 0x1b4   :  { %1772 = vst.msk [vmem:[%s3837_s2 + $0x48] sm:$0xff] %vm1763_vm1, %v1962_v29  ;;  %v1964_v8 = vadd.f32 %v1679_v6, %v3564_v46 }
 0x1b5   :  { %1773 = vst [vmem:[%s3837_s2 + $0x50] sm:$0xff] %v1963_v5 }
 0x1b6   :  { %1774 = vst.msk [vmem:[%s3837_s2 + $0x58] sm:$0xff] %vm1763_vm1, %v1964_v8 }
 0x1b7   :  { %v1314_v35 = vpop.f32.mrb[36].mxu1 }
 0x1b8   :  { %v3668_v9 = vadd.f32 %v3544_v12, %v1314_v35  ;;  %v1683_v45 = vpop.f32.mrb[12].mxu0  ;;  %v1316_v41 = vpop.f32.mrb[37].mxu1 }
 0x1b9   :  { %v1965_v42 = vadd.f32 %v1683_v45, %v3566_v60  ;;  %v3672_v44 = vadd.f32 %v3546_v17, %v1316_v41  ;;  %v1685_v46 = vpop.f32.mrb[13].mxu0  ;;  %v1318_v47 = vpop.f32.mrb[38].mxu1 }
 0x1ba   :  { %v1966_v48 = vadd.f32 %v1685_v46, %v3568_v4  ;;  %v3676_v50 = vadd.f32 %v3548_v20, %v1318_v47  ;;  %v1687_v52 = vpop.f32.mrb[14].mxu0  ;;  %v1320_v55 = vpop.f32.mrb[39].mxu1 }
 0x1bb   :  { %1775 = vst [vmem:[%s3837_s2 + $0x60] sm:$0xff] %v1965_v42  ;;  %v1967_v12 = vadd.f32 %v1687_v52, %v3570_v15  ;;  %v3683_v60 = vadd.f32 %v3550_v22, %v1320_v55  ;;  %v1689_v17 = vpop.f32.mrb[15].mxu0 }
 0x1bc   :  { %1776 = vst.msk [vmem:[%s3837_s2 + $0x68] sm:$0xff] %vm1763_vm1, %v1966_v48  ;;  %v1968_v20 = vadd.f32 %v1689_v17, %v3572_v18 }
 0x1bd   :  { %1777 = vst [vmem:[%s3837_s2 + $0x70] sm:$0xff] %v1967_v12 }
 0x1be   :  { %1778 = vst.msk [vmem:[%s3837_s2 + $0x78] sm:$0xff] %vm1763_vm1, %v1968_v20 }
 0x1bf   :  { %v1324_v4 = vpop.f32.mrb[40].mxu1 }
 0x1c0   :  { %v3698_v22 = vadd.f32 %v3552_v23, %v1324_v4  ;;  %v1693_v15 = vpop.f32.mrb[16].mxu0  ;;  %v1326_v58 = vpop.f32.mrb[41].mxu1 }
 0x1c1   :  { %v1969_v59 = vadd.f32 %v1693_v15, %v3574_v33  ;;  %v3702_v37 = vadd.f32 %v3554_v19, %v1326_v58  ;;  %v1695_v18 = vpop.f32.mrb[17].mxu0  ;;  %v1328_v49 = vpop.f32.mrb[42].mxu1 }
 0x1c2   :  { %v1970_v51 = vadd.f32 %v1695_v18, %v3576_v36  ;;  %v3706_v62 = vadd.f32 %v3556_v24, %v1328_v49  ;;  %v1697_v61 = vpop.f32.mrb[18].mxu0  ;;  %v1330_v0 = vpop.f32.mrb[43].mxu1 }
 0x1c3   :  { %1779 = vst [vmem:[%s3837_s2 + $0x80] sm:$0xff] %v1969_v59  ;;  %v1971_v23 = vadd.f32 %v1697_v61, %v3578_v54  ;;  %v3713_v33 = vadd.f32 %v3558_v32, %v1330_v0  ;;  %v1699_v19 = vpop.f32.mrb[19].mxu0 }
 0x1c4   :  { %1780 = vst.msk [vmem:[%s3837_s2 + $0x88] sm:$0xff] %vm1763_vm1, %v1970_v51  ;;  %v1972_v24 = vadd.f32 %v1699_v19, %v3580_v56 }
 0x1c5   :  { %1781 = vst [vmem:[%s3837_s2 + $0x90] sm:$0xff] %v1971_v23 }
 0x1c6   :  { %1782 = vst.msk [vmem:[%s3837_s2 + $0x98] sm:$0xff] %vm1763_vm1, %v1972_v24 }
 0x1c7   :  { %v1570_v36 = vpop.f32.mrb[44].mxu1 }
 0x1c8   :  { %v1978_v32 = vadd.f32 %v3590_v1, %v1570_v36  ;;  %v1703_v54 = vpop.f32.mrb[20].mxu0  ;;  %v1572_v2 = vpop.f32.mrb[45].mxu1 }
 0x1c9   :  { %v1973_v63 = vadd.f32 %v1703_v54, %v3582_v7  ;;  %v1981_v14 = vadd.f32 %v3592_v27, %v1572_v2  ;;  %v1705_v13 = vpop.f32.mrb[21].mxu0  ;;  %v1574_v56 = vpop.f32.mrb[46].mxu1 }
 0x1ca   :  { %v1974_v16 = vadd.f32 %v1705_v13, %v3584_v10  ;;  %v1984_v26 = vadd.f32 %v3594_v38, %v1574_v56  ;;  %v1707_v29 = vpop.f32.mrb[22].mxu0  ;;  %v1576_v34 = vpop.f32.mrb[47].mxu1 }
 0x1cb   :  { %1783 = vst [vmem:[%s3837_s2 + $0xa0] sm:$0xff] %v1973_v63  ;;  %v1975_v1 = vadd.f32 %v1707_v29, %v3586_v30  ;;  %v1987_v40 = vadd.f32 %v3599_v43, %v1576_v34  ;;  %v1709_v5 = vpop.f32.mrb[23].mxu0 }
 0x1cc   :  { %1784 = vst.msk [vmem:[%s3837_s2 + $0xa8] sm:$0xff] %vm1763_vm1, %v1974_v16  ;;  %v1976_v7 = vadd.f32 %v1709_v5, %v3588_v39 }
 0x1cd   :  { %1785 = vst [vmem:[%s3837_s2 + $0xb0] sm:$0xff] %v1975_v1 }
 0x1ce   :  { %1786 = vst.msk [vmem:[%s3837_s2 + $0xb8] sm:$0xff] %vm1763_vm1, %v1976_v7 }
 0x1cf   :  { %v1580_v10 = vpop.f32.mrb[48].mxu1 }
 0x1d0   :  { %v1990_v30 = vadd.f32 %v3613_v11, %v1580_v10  ;;  %v1713_v27 = vpop.f32.mrb[44].mxu0  ;;  %v1582_v38 = vpop.f32.mrb[49].mxu1 }
 0x1d1   :  { %v1979_v43 = vadd.f32 %v1978_v32, %v1713_v27  ;;  %v1993_v6 = vadd.f32 %v3616_v57, %v1582_v38  ;;  %v1715_v8 = vpop.f32.mrb[45].mxu0  ;;  %v1584_v35 = vpop.f32.mrb[50].mxu1 }
 0x1d2   :  { %v1982_v39 = vadd.f32 %v1981_v14, %v1715_v8  ;;  %v1996_v45 = vadd.f32 %v3619_v25, %v1584_v35  ;;  %v1717_v41 = vpop.f32.mrb[46].mxu0  ;;  %v1586_v42 = vpop.f32.mrb[51].mxu1 }
 0x1d3   :  { %1787 = vst [vmem:[%s3837_s2 + $0xc0] sm:$0xff] %v1979_v43  ;;  %v1985_v46 = vadd.f32 %v1984_v26, %v1717_v41  ;;  %v1999_v47 = vadd.f32 %v3625_v53, %v1586_v42  ;;  %v1719_v11 = vpop.f32.mrb[47].mxu0 }
 0x1d4   :  { %1788 = vst.msk [vmem:[%s3837_s2 + $0xc8] sm:$0xff] %vm1763_vm1, %v1982_v39  ;;  %v1988_v57 = vadd.f32 %v1987_v40, %v1719_v11 }
 0x1d5   :  { %1789 = vst [vmem:[%s3837_s2 + $0xd0] sm:$0xff] %v1985_v46 }
 0x1d6   :  { %1790 = vst.msk [vmem:[%s3837_s2 + $0xd8] sm:$0xff] %vm1763_vm1, %v1988_v57 }
 0x1d7   :  { %v1590_v25 = vpop.f32.mrb[52].mxu1 }
 0x1d8   :  { %v2002_v48 = vadd.f32 %v3639_v3, %v1590_v25  ;;  %v1723_v53 = vpop.f32.mrb[48].mxu0  ;;  %v1592_v52 = vpop.f32.mrb[53].mxu1 }
 0x1d9   :  { %v1991_v55 = vadd.f32 %v1990_v30, %v1723_v53  ;;  %v2005_v12 = vadd.f32 %v3642_v21, %v1592_v52  ;;  %v1725_v17 = vpop.f32.mrb[49].mxu0  ;;  %v1594_v20 = vpop.f32.mrb[54].mxu1 }
 0x1da   :  { %v1994_v4 = vadd.f32 %v1993_v6, %v1725_v17  ;;  %v2008_v15 = vadd.f32 %v3646_v31, %v1594_v20  ;;  %v1727_v58 = vpop.f32.mrb[50].mxu0  ;;  %v1596_v59 = vpop.f32.mrb[55].mxu1 }
 0x1db   :  { %1791 = vst [vmem:[%s3837_s2 + $0xe0] sm:$0xff] %v1991_v55  ;;  %v1997_v18 = vadd.f32 %v1996_v45, %v1727_v58  ;;  %v2011_v49 = vadd.f32 %v3653_v28, %v1596_v59  ;;  %v1729_v3 = vpop.f32.mrb[51].mxu0 }
 0x1dc   :  { %1792 = vst.msk [vmem:[%s3837_s2 + $0xe8] sm:$0xff] %vm1763_vm1, %v1994_v4  ;;  %v2000_v21 = vadd.f32 %v1999_v47, %v1729_v3 }
 0x1dd   :  { %1793 = vst [vmem:[%s3837_s2 + $0xf0] sm:$0xff] %v1997_v18 }
 0x1de   :  { %1794 = vst.msk [vmem:[%s3837_s2 + $0xf8] sm:$0xff] %vm1763_vm1, %v2000_v21 }
 0x1df   :  { %v1600_v31 = vpop.f32.mrb[56].mxu1 }
 0x1e0   :  { %v2014_v51 = vadd.f32 %v3668_v9, %v1600_v31  ;;  %v1733_v28 = vpop.f32.mrb[52].mxu0  ;;  %v1602_v61 = vpop.f32.mrb[57].mxu1 }
 0x1e1   :  { %v2003_v0 = vadd.f32 %v2002_v48, %v1733_v28  ;;  %v2017_v23 = vadd.f32 %v3672_v44, %v1602_v61  ;;  %v1735_v19 = vpop.f32.mrb[53].mxu0  ;;  %v1604_v24 = vpop.f32.mrb[58].mxu1 }
 0x1e2   :  { %v2006_v36 = vadd.f32 %v2005_v12, %v1735_v19  ;;  %v2020_v32 = vadd.f32 %v3676_v50, %v1604_v24  ;;  %v1737_v54 = vpop.f32.mrb[54].mxu0  ;;  %v1606_v2 = vpop.f32.mrb[59].mxu1 }
 0x1e3   :  { %1795 = vst [vmem:[%s3837_s2 + $0x100] sm:$0xff] %v2003_v0  ;;  %v2009_v63 = vadd.f32 %v2008_v15, %v1737_v54  ;;  %v2023_v14 = vadd.f32 %v3683_v60, %v1606_v2  ;;  %v1739_v9 = vpop.f32.mrb[55].mxu0 }
 0x1e4   :  { %1796 = vst.msk [vmem:[%s3837_s2 + $0x108] sm:$0xff] %vm1763_vm1, %v2006_v36  ;;  %v2012_v44 = vadd.f32 %v2011_v49, %v1739_v9 }
 0x1e5   :  { %1797 = vst [vmem:[%s3837_s2 + $0x110] sm:$0xff] %v2009_v63 }
 0x1e6   :  { %1798 = vst.msk [vmem:[%s3837_s2 + $0x118] sm:$0xff] %vm1763_vm1, %v2012_v44 }
 0x1e7   :  { %v1610_v50 = vpop.f32.mrb[60].mxu1 }
 0x1e8   :  { %v2026_v13 = vadd.f32 %v3698_v22, %v1610_v50  ;;  %v1743_v60 = vpop.f32.mrb[56].mxu0  ;;  %v1612_v56 = vpop.f32.mrb[61].mxu1 }
 0x1e9   :  { %v2015_v16 = vadd.f32 %v2014_v51, %v1743_v60  ;;  %v2029_v26 = vadd.f32 %v3702_v37, %v1612_v56  ;;  %v1745_v29 = vpop.f32.mrb[57].mxu0  ;;  %v1614_v34 = vpop.f32.mrb[62].mxu1 }
 0x1ea   :  { %v2018_v1 = vadd.f32 %v2017_v23, %v1745_v29  ;;  %v2032_v40 = vadd.f32 %v3706_v62, %v1614_v34  ;;  %v1747_v5 = vpop.f32.mrb[58].mxu0  ;;  %v1616_v7 = vpop.f32.mrb[63].mxu1 }
 0x1eb   :  { %1799 = vst [vmem:[%s3837_s2 + $0x120] sm:$0xff] %v2015_v16  ;;  %v2021_v10 = vadd.f32 %v2020_v32, %v1747_v5  ;;  %v2035_v30 = vadd.f32 %v3713_v33, %v1616_v7  ;;  %v1749_v22 = vpop.f32.mrb[59].mxu0 }
 0x1ec   :  { %1800 = vst.msk [vmem:[%s3837_s2 + $0x128] sm:$0xff] %vm1763_vm1, %v2018_v1  ;;  %v2024_v37 = vadd.f32 %v2023_v14, %v1749_v22 }
 0x1ed   :  { %1801 = vst [vmem:[%s3837_s2 + $0x130] sm:$0xff] %v2021_v10 }
 0x1ee   :  { %1802 = vst.msk [vmem:[%s3837_s2 + $0x138] sm:$0xff] %vm1763_vm1, %v2024_v37 }
 0x1f0   :  { %v1753_v62 = vpop.f32.mrb[60].mxu0 }
 0x1f1   :  { %v2027_v27 = vadd.f32 %v2026_v13, %v1753_v62  ;;  %v1755_v38 = vpop.f32.mrb[61].mxu0 }
 0x1f2   :  { %v2030_v33 = vadd.f32 %v2029_v26, %v1755_v38  ;;  %v1757_v43 = vpop.f32.mrb[62].mxu0 }
 0x1f3   :  { %1803 = vst [vmem:[%s3837_s2 + $0x140] sm:$0xff] %v2027_v27  ;;  %v2033_v6 = vadd.f32 %v2032_v40, %v1757_v43  ;;  %v1759_v8 = vpop.f32.mrb[63].mxu0 }
 0x1f4   :  { %1804 = vst.msk [vmem:[%s3837_s2 + $0x148] sm:$0xff] %vm1763_vm1, %v2030_v33  ;;  %v2036_v35 = vadd.f32 %v2035_v30, %v1759_v8 }
 0x1f5   :  { %1805 = vst [vmem:[%s3837_s2 + $0x150] sm:$0xff] %v2033_v6 }
 0x1f6   :  { %1806 = vst.msk [vmem:[%s3837_s2 + $0x158] sm:$0xff] %vm1763_vm1, %v2036_v35 }

</bundles_post_ra>
